<compile_context>
chip_gen: v5e
topology: v5e:2x2
jax: 0.10.0
libtpu: 0.0.40
codegen_flags: <defaults>
</compile_context>

<pallas_src>
import jax
import jax.numpy as jnp
import numpy as np
from jax import lax
from jax.experimental import pallas as pl
from jax.experimental.pallas import tpu as pltpu


def term_decoder_kernel(len_ref,                     # SMEM (B,) int32 (scalar prefetch)
                        enc_ref, emb_ref,            # (BB, E), (Tp, BB, H)
                        w_init_ref, b_init_ref,
                        w_ih_ref, b_ih_ref, w_hh_ref, b_hh_ref,
                        w_fc_hbm, b_fc_ref,          # w_fc stays in HBM (pl.ANY)
                        logp_ref, hlast_ref,
                        gi_scr, out_tm, out_bm, wfc_vmem, fc_sem):
    Tp, BB, H = emb_ref.shape
    V = b_fc_ref.shape[1]
    bb = pl.program_id(0)

    # ---- prefetch w_fc HBM->VMEM; only needed after the recurrence, so its DMA
    #      is fully hidden behind the serial GRU loop.  (Re-issued per batch
    #      block so it stays correct under megacore "parallel" partitioning.)
    fc_copy = pltpu.make_async_copy(w_fc_hbm, wfc_vmem, fc_sem.at[0])
    fc_copy.start()

    # ---- init_gru_hidden: ReLU(Linear(encoder_out)) ----
    h0 = jnp.maximum(
        jnp.dot(enc_ref[...], w_init_ref[...], preferred_element_type=jnp.float32)
        + b_init_ref[...],
        0.0,
    )  # (BB, H) f32

    # ---- hoisted loop invariants ----
    # caption lengths for this batch block, read from SMEM and pre-broadcast to
    # (BB, H) so the per-step mask is a single vcmp.
    base = bb * BB
    row_iota = lax.broadcasted_iota(jnp.int32, (BB, 1), 0)
    len_col = jnp.zeros((BB, 1), jnp.int32)
    for j in range(BB):                                  # BB is static, runs once
        len_col = len_col + jnp.where(row_iota == j, len_ref[base + j], 0)
    len_bh = jnp.broadcast_to(len_col, (BB, H))          # (BB, H) int32
    b_hh_b = jnp.broadcast_to(b_hh_ref[...], (BB, 3 * H))
    w_hh = w_hh_ref[...]                                 # (H, 3H) f32

    # ---- all input->hidden gates in one fused matmul (off the serial path) ----
    x_all = jnp.maximum(emb_ref[...], 0.0).reshape(Tp * BB, H)   # relu(dropout(emb))
    gi_all = (jnp.dot(x_all.astype(w_ih_ref.dtype), w_ih_ref[...],
                      preferred_element_type=jnp.float32)
              + b_ih_ref[...])                                    # (Tp*BB, 3H) f32
    gi_scr[...] = gi_all.reshape(Tp, BB, 3 * H)                   # time-major scratch

    # ---- GRU recurrence (PyTorch gate order r, z, n); one (BB,H)@(H,3H) dot per
    #      step is the only MXU work on the serial path. ----
    def step(t, h):
        gi = gi_scr[t]                                            # (BB, 3H), contiguous
        gh = jnp.dot(h, w_hh, preferred_element_type=jnp.float32) + b_hh_b
        r = jax.nn.sigmoid(gi[:, 0:H] + gh[:, 0:H])
        z = jax.nn.sigmoid(gi[:, H:2 * H] + gh[:, H:2 * H])
        n = jnp.tanh(gi[:, 2 * H:3 * H] + r * gh[:, 2 * H:3 * H])
        h_new = (1.0 - z) * n + z * h
        v = t < len_bh                                            # single vcmp
        out_tm[t] = jnp.where(v, h_new, 0.0)    # packed-seq: padded rows are zero
        return jnp.where(v, h_new, h)           # rows past length keep old hidden

    h_last = lax.fori_loop(0, Tp, step, h0, unroll=True)
    hlast_ref[...] = h_last

    # ---- time-major -> batch-major relayout, off the serial path (static copies)
    for t in range(Tp):
        out_bm[:, t, :] = out_tm[t]

    # ---- fc + log_softmax once over all rows; wait on the prefetched w_fc here.
    fc_copy.wait()
    rows = out_bm[...].reshape(BB * Tp, H).astype(wfc_vmem.dtype)
    logits = (jnp.dot(rows, wfc_vmem[...], preferred_element_type=jnp.float32)
              + b_fc_ref[...])                                    # (BB*Tp, V)
    m = jnp.max(logits, axis=-1, keepdims=True)
    lse = jnp.log(jnp.sum(jnp.exp(logits - m), axis=-1, keepdims=True)) + m
    logp_ref[...] = (logits - lse).reshape(BB, Tp, V)


def init_params(key, vocab, hidden, encoder_dim):
    """Deterministic synthetic parameters (shapes match the PyTorch module)."""
    ks = jax.random.split(key, 9)
    s_h = 1.0 / np.sqrt(hidden)
    s_e = 1.0 / np.sqrt(encoder_dim)

    def u(k, shape, scale):
        return jax.random.uniform(k, shape, jnp.float32, -scale, scale)

    emb_w = jax.random.normal(ks[0], (vocab, hidden), jnp.float32)
    emb_w = emb_w.at[0].set(0.0)  # padding_idx=0

    return {
        "emb_w": emb_w,                                      # (V, H)
        "w_init": u(ks[1], (encoder_dim, hidden), s_e),      # (E, H)  (pre-transposed)
        "b_init": u(ks[2], (1, hidden), s_e),                # (1, H)
        "w_ih": u(ks[3], (3, hidden, hidden), s_h),          # (3, H, H) gate order r,z,n
        "b_ih": u(ks[4], (3, 1, hidden), s_h),               # (3, 1, H)
        "w_hh": u(ks[5], (3, hidden, hidden), s_h),          # (3, H, H)
        "b_hh": u(ks[6], (3, 1, hidden), s_h),               # (3, 1, H)
        "w_fc": u(ks[7], (hidden, vocab), s_h),              # (H, V)
        "b_fc": u(ks[8], (1, vocab), s_h),                   # (1, V)
    }


def term_decoder_forward(params, encoder_out, encoded_captions, caption_lengths,
                         *, matmul_dtype=jnp.float32):
    """Returns (out_terms (B, T, V) log-probs, hidden_last (1, B, H)).

    matmul_dtype=jnp.bfloat16 casts the two big off-serial-path matmuls
    (input-gate fuse and fc) for v6e/v7x; default f32 keeps 1e-5 accuracy.
    """
    B, T = encoded_captions.shape
    E = encoder_out.shape[1]
    H = params["w_init"].shape[1]
    V = params["w_fc"].shape[1]

    # pad T to a sublane multiple so (Tp*B, .) reshapes stay cheap
    Tp = ((T + 7) // 8) * 8
    # batch block: split across grid points (v7x megacore) when sublane-aligned
    BB = B // 2 if (B % 16 == 0) else B
    nb = B // BB

    # embedding gather (glue), pad time, go time-major off the serial path
    emb = jnp.take(params["emb_w"], encoded_captions, axis=0)            # (B, T, H)
    if Tp != T:
        emb = jnp.pad(emb, ((0, 0), (0, Tp - T), (0, 0)))
    emb_tm = jnp.transpose(emb, (1, 0, 2)).astype(matmul_dtype)          # (Tp, B, H)
    lengths = caption_lengths.astype(jnp.int32).reshape(B)               # (B,) -> SMEM

    # fuse the three GRU gate matrices/biases along the output axis (r|z|n order)
    w_ih_cat = jnp.concatenate([params["w_ih"][g] for g in range(3)],
                               axis=1).astype(matmul_dtype)              # (H, 3H)
    b_ih_cat = jnp.concatenate([params["b_ih"][g] for g in range(3)], axis=1)
    w_hh_cat = jnp.concatenate([params["w_hh"][g] for g in range(3)], axis=1)
    b_hh_cat = jnp.concatenate([params["b_hh"][g] for g in range(3)], axis=1)
    w_fc = params["w_fc"].astype(matmul_dtype)                           # (H, V)

    grid_spec = pltpu.PrefetchScalarGridSpec(
        num_scalar_prefetch=1,                       # caption_lengths -> SMEM
        grid=(nb,),
        in_specs=[
            pl.BlockSpec((BB, E), lambda i, ln: (i, 0)),          # encoder_out
            pl.BlockSpec((Tp, BB, H), lambda i, ln: (0, i, 0)),   # emb, time-major
            pl.BlockSpec((E, H), lambda i, ln: (0, 0)),           # w_init
            pl.BlockSpec((1, H), lambda i, ln: (0, 0)),           # b_init
            pl.BlockSpec((H, 3 * H), lambda i, ln: (0, 0)),       # w_ih (fused)
            pl.BlockSpec((1, 3 * H), lambda i, ln: (0, 0)),       # b_ih
            pl.BlockSpec((H, 3 * H), lambda i, ln: (0, 0)),       # w_hh (fused)
            pl.BlockSpec((1, 3 * H), lambda i, ln: (0, 0)),       # b_hh
            pl.BlockSpec(memory_space=pl.ANY),                    # w_fc stays in HBM
            pl.BlockSpec((1, V), lambda i, ln: (0, 0)),           # b_fc
        ],
        out_specs=(
            pl.BlockSpec((BB, Tp, V), lambda i, ln: (i, 0, 0)),   # log-probs
            pl.BlockSpec((BB, H), lambda i, ln: (i, 0)),          # last hidden
        ),
        scratch_shapes=[
            pltpu.VMEM((Tp, BB, 3 * H), jnp.float32),   # gi, time-major
            pltpu.VMEM((Tp, BB, H), jnp.float32),       # GRU outputs, time-major
            pltpu.VMEM((BB, Tp, H), jnp.float32),       # batch-major relayout
            pltpu.VMEM((H, V), w_fc.dtype),             # prefetched w_fc
            pltpu.SemaphoreType.DMA((1,)),
        ],
    )

    logp, h_last = pl.pallas_call(
        term_decoder_kernel,
        out_shape=(jax.ShapeDtypeStruct((B, Tp, V), jnp.float32),
                   jax.ShapeDtypeStruct((B, H), jnp.float32)),
        grid_spec=grid_spec,
        compiler_params=pltpu.CompilerParams(
            dimension_semantics=("parallel",)),
    )(lengths, encoder_out.astype(jnp.float32), emb_tm,
      params["w_init"], params["b_init"],
      w_ih_cat, b_ih_cat, w_hh_cat, b_hh_cat,
      w_fc, params["b_fc"])

    return logp[:, :T, :], h_last[None]    # (B, T, V), (1, B, H)


def reference_forward(params, encoder_out, encoded_captions, caption_lengths):
    """Pure-JAX reference with identical semantics (for a correctness check)."""
    B, T = encoded_captions.shape
    h = jax.nn.relu(encoder_out @ params["w_init"] + params["b_init"])
    emb = jax.nn.relu(jnp.take(params["emb_w"], encoded_captions, axis=0))  # (B, T, H)
    lengths = caption_lengths.astype(jnp.int32).reshape(B, 1)
    outs = []
    for t in range(T):
        x = emb[:, t]
        gi = [x @ params["w_ih"][g] + params["b_ih"][g] for g in range(3)]
        gh = [h @ params["w_hh"][g] + params["b_hh"][g] for g in range(3)]
        r = jax.nn.sigmoid(gi[0] + gh[0])
        z = jax.nn.sigmoid(gi[1] + gh[1])
        n = jnp.tanh(gi[2] + r * gh[2])
        h_new = (1.0 - z) * n + z * h
        valid = (t < lengths).astype(jnp.float32)
        h = valid * h_new + (1.0 - valid) * h
        out_h = valid * h_new
        logits = out_h @ params["w_fc"] + params["b_fc"]
        outs.append(jax.nn.log_softmax(logits, axis=-1))
    return jnp.stack(outs, axis=1), h[None]


if __name__ == "__main__":
    # small shapes consistent with the module's forward signature
    B, T = 2, 8           # batch, max_caption_length
    E, H, V = 48, 32, 16  # encoder_dim, hidden_dim, vocabulary_size

    key = jax.random.PRNGKey(0)
    k_par, k_enc, k_cap = jax.random.split(key, 3)

    params = init_params(k_par, V, H, E)
    encoder_out = jax.random.normal(k_enc, (B, E), jnp.float32)
    encoded_captions = jax.random.randint(k_cap, (B, T), 1, V).astype(jnp.int32)
    caption_lengths = jnp.array([T, 5], dtype=jnp.int32)
    # zero-out (pad) tokens past each length, as real padded captions would be
    tmask = jnp.arange(T)[None, :] < caption_lengths[:, None]
    encoded_captions = jnp.where(tmask, encoded_captions, 0)

    out_terms, hidden_last = term_decoder_forward(
        params, encoder_out, encoded_captions, caption_lengths)
    jax.block_until_ready((out_terms, hidden_last))

    ref_terms, ref_hidden = reference_forward(
        params, encoder_out, encoded_captions, caption_lengths)
    np.testing.assert_allclose(np.asarray(out_terms), np.asarray(ref_terms),
                               rtol=1e-5, atol=1e-5)
    np.testing.assert_allclose(np.asarray(hidden_last), np.asarray(ref_hidden),
                               rtol=1e-5, atol=1e-5)

    assert out_terms.shape == (B, T, V) and hidden_last.shape == (1, B, H)
    print("KERNEL_OK")
</pallas_src>

<mosaic_0001>
module attributes {stable_mosaic.version = 11 : i64} {
  func.func @term_decoder_kernel(%arg0: i32, %arg1: memref<2xi32, #tpu.memory_space<smem>>, %arg2: memref<2x48xf32, #tpu.memory_space<vmem>>, %arg3: memref<8x2x32xf32, #tpu.memory_space<vmem>>, %arg4: memref<48x32xf32, #tpu.memory_space<vmem>>, %arg5: memref<1x32xf32, #tpu.memory_space<vmem>>, %arg6: memref<32x96xf32, #tpu.memory_space<vmem>>, %arg7: memref<1x96xf32, #tpu.memory_space<vmem>>, %arg8: memref<32x96xf32, #tpu.memory_space<vmem>>, %arg9: memref<1x96xf32, #tpu.memory_space<vmem>>, %arg10: memref<32x16xf32, #tpu.memory_space<any>>, %arg11: memref<1x16xf32, #tpu.memory_space<vmem>>, %arg12: memref<2x8x16xf32, #tpu.memory_space<vmem>>, %arg13: memref<2x32xf32, #tpu.memory_space<vmem>>, %arg14: memref<8x2x96xf32, #tpu.memory_space<vmem>>, %arg15: memref<8x2x32xf32, #tpu.memory_space<vmem>>, %arg16: memref<2x8x32xf32, #tpu.memory_space<vmem>>, %arg17: memref<32x16xf32, #tpu.memory_space<vmem>>, %arg18: memref<1x!tpu.dma_semaphore, #tpu.memory_space<semaphore_mem>>) attributes {dimension_semantics = [#tpu.dimension_semantics<parallel>], iteration_bounds = array<i64: 1>, scalar_prefetch = 1 : i64, scratch_operands = 5 : i64, tpu.core_type = #tpu.core_type<tc>, window_params = [{transform_indices = @transform_0, window_bounds = array<i64: 2, 48>}, {transform_indices = @transform_1, window_bounds = array<i64: 8, 2, 32>}, {pipeline_mode = #tpu.pipeline_mode<synchronous>, transform_indices = @transform_2, window_bounds = array<i64: 48, 32>}, {pipeline_mode = #tpu.pipeline_mode<synchronous>, transform_indices = @transform_3, window_bounds = array<i64: 1, 32>}, {pipeline_mode = #tpu.pipeline_mode<synchronous>, transform_indices = @transform_4, window_bounds = array<i64: 32, 96>}, {pipeline_mode = #tpu.pipeline_mode<synchronous>, transform_indices = @transform_5, window_bounds = array<i64: 1, 96>}, {pipeline_mode = #tpu.pipeline_mode<synchronous>, transform_indices = @transform_6, window_bounds = array<i64: 32, 96>}, {pipeline_mode = #tpu.pipeline_mode<synchronous>, transform_indices = @transform_7, window_bounds = array<i64: 1, 96>}, {}, {pipeline_mode = #tpu.pipeline_mode<synchronous>, transform_indices = @transform_9, window_bounds = array<i64: 1, 16>}, {transform_indices = @transform_10, window_bounds = array<i64: 2, 8, 16>}, {transform_indices = @transform_11, window_bounds = array<i64: 2, 32>}]} {
    %c0_i32 = arith.constant 0 : i32
    %0 = tpu.memref_slice %arg18[%c0_i32] : memref<1x!tpu.dma_semaphore, #tpu.memory_space<semaphore_mem>> -> memref<1x!tpu.dma_semaphore, #tpu.memory_space<semaphore_mem>>
    %1 = tpu.memref_squeeze %0 : memref<1x!tpu.dma_semaphore, #tpu.memory_space<semaphore_mem>> -> memref<!tpu.dma_semaphore, #tpu.memory_space<semaphore_mem>>
    tpu.enqueue_dma source(%arg10 : memref<32x16xf32, #tpu.memory_space<any>>) target(%arg17 : memref<32x16xf32, #tpu.memory_space<vmem>>) target_semaphore(%1 : memref<!tpu.dma_semaphore, #tpu.memory_space<semaphore_mem>>)
    %c0 = arith.constant 0 : index
    %c0_0 = arith.constant 0 : index
    %2 = vector.load %arg2[%c0, %c0_0] : memref<2x48xf32, #tpu.memory_space<vmem>>, vector<2x48xf32>
    %c0_1 = arith.constant 0 : index
    %c0_2 = arith.constant 0 : index
    %3 = vector.load %arg4[%c0_1, %c0_2] : memref<48x32xf32, #tpu.memory_space<vmem>>, vector<48x32xf32>
    %cst = arith.constant dense<0.000000e+00> : vector<2x32xf32>
    %4 = tpu.matmul %2, %3, %cst {dimension_numbers = #tpu.dot_dimension_numbers<[1], [0], [0], [1], [0, 0, 1, 1], [], []>} : vector<2x48xf32>, vector<48x32xf32>, vector<2x32xf32> -> vector<2x32xf32>
    %c0_3 = arith.constant 0 : index
    %c0_4 = arith.constant 0 : index
    %5 = vector.load %arg5[%c0_3, %c0_4] : memref<1x32xf32, #tpu.memory_space<vmem>>, vector<1x32xf32>
    %6 = vector.broadcast %5 : vector<1x32xf32> to vector<2x32xf32>
    %7 = arith.addf %4, %6 : vector<2x32xf32>
    %cst_5 = arith.constant 0.000000e+00 : f32
    %8 = vector.broadcast %cst_5 : f32 to vector<2x32xf32>
    %9 = arith.maximumf %7, %8 : vector<2x32xf32>
    %c2_i32 = arith.constant 2 : i32
    %10 = arith.muli %arg0, %c2_i32 : i32
    %11 = tpu.iota {dimensions = array<i32: 0>} : vector<2x1xi32>
    %c0_i32_6 = arith.constant 0 : i32
    %12 = vector.broadcast %c0_i32_6 : i32 to vector<2x1xi32>
    %c0_i32_7 = arith.constant 0 : i32
    %13 = vector.broadcast %c0_i32_7 : i32 to vector<2x1xi32>
    %14 = arith.cmpi eq, %11, %13 : vector<2x1xi32>
    %c0_i32_8 = arith.constant 0 : i32
    %15 = arith.addi %10, %c0_i32_8 : i32
    %16 = arith.index_cast %15 : i32 to index
    %17 = memref.load %arg1[%16] : memref<2xi32, #tpu.memory_space<smem>>
    %c0_i32_9 = arith.constant 0 : i32
    %18 = vector.broadcast %17 : i32 to vector<2x1xi32>
    %19 = vector.broadcast %c0_i32_9 : i32 to vector<2x1xi32>
    %20 = arith.select %14, %18, %19 : vector<2x1xi1>, vector<2x1xi32>
    %21 = arith.addi %12, %20 : vector<2x1xi32>
    %c1_i32 = arith.constant 1 : i32
    %22 = vector.broadcast %c1_i32 : i32 to vector<2x1xi32>
    %23 = arith.cmpi eq, %11, %22 : vector<2x1xi32>
    %c1_i32_10 = arith.constant 1 : i32
    %24 = arith.addi %10, %c1_i32_10 : i32
    %25 = arith.index_cast %24 : i32 to index
    %26 = memref.load %arg1[%25] : memref<2xi32, #tpu.memory_space<smem>>
    %c0_i32_11 = arith.constant 0 : i32
    %27 = vector.broadcast %26 : i32 to vector<2x1xi32>
    %28 = vector.broadcast %c0_i32_11 : i32 to vector<2x1xi32>
    %29 = arith.select %23, %27, %28 : vector<2x1xi1>, vector<2x1xi32>
    %30 = arith.addi %21, %29 : vector<2x1xi32>
    %31 = vector.shape_cast %30 : vector<2x1xi32> to vector<2x1xi32>
    %32 = vector.broadcast %31 : vector<2x1xi32> to vector<2x32xi32>
    %c0_12 = arith.constant 0 : index
    %c0_13 = arith.constant 0 : index
    %33 = vector.load %arg9[%c0_12, %c0_13] : memref<1x96xf32, #tpu.memory_space<vmem>>, vector<1x96xf32>
    %34 = vector.shape_cast %33 : vector<1x96xf32> to vector<1x96xf32>
    %35 = vector.broadcast %34 : vector<1x96xf32> to vector<2x96xf32>
    %c0_14 = arith.constant 0 : index
    %c0_15 = arith.constant 0 : index
    %36 = vector.load %arg8[%c0_14, %c0_15] : memref<32x96xf32, #tpu.memory_space<vmem>>, vector<32x96xf32>
    %c0_16 = arith.constant 0 : index
    %c0_17 = arith.constant 0 : index
    %c0_18 = arith.constant 0 : index
    %37 = vector.load %arg3[%c0_16, %c0_17, %c0_18] : memref<8x2x32xf32, #tpu.memory_space<vmem>>, vector<8x2x32xf32>
    %cst_19 = arith.constant 0.000000e+00 : f32
    %38 = vector.broadcast %cst_19 : f32 to vector<8x2x32xf32>
    %39 = arith.maximumf %37, %38 : vector<8x2x32xf32>
    %40 = vector.shape_cast %39 : vector<8x2x32xf32> to vector<16x32xf32>
    %c0_20 = arith.constant 0 : index
    %c0_21 = arith.constant 0 : index
    %41 = vector.load %arg6[%c0_20, %c0_21] : memref<32x96xf32, #tpu.memory_space<vmem>>, vector<32x96xf32>
    %cst_22 = arith.constant dense<0.000000e+00> : vector<16x96xf32>
    %42 = tpu.matmul %40, %41, %cst_22 {dimension_numbers = #tpu.dot_dimension_numbers<[1], [0], [0], [1], [0, 0, 1, 1], [], []>} : vector<16x32xf32>, vector<32x96xf32>, vector<16x96xf32> -> vector<16x96xf32>
    %c0_23 = arith.constant 0 : index
    %c0_24 = arith.constant 0 : index
    %43 = vector.load %arg7[%c0_23, %c0_24] : memref<1x96xf32, #tpu.memory_space<vmem>>, vector<1x96xf32>
    %44 = vector.broadcast %43 : vector<1x96xf32> to vector<16x96xf32>
    %45 = arith.addf %42, %44 : vector<16x96xf32>
    %46 = vector.shape_cast %45 : vector<16x96xf32> to vector<8x2x96xf32>
    %c0_25 = arith.constant 0 : index
    %c0_26 = arith.constant 0 : index
    %c0_27 = arith.constant 0 : index
    %47 = vector.load %arg14[%c0_25, %c0_26, %c0_27] : memref<8x2x96xf32, #tpu.memory_space<vmem>>, vector<8x2x96xf32>
    tpu.vector_store %arg14[%c0_25, %c0_26, %c0_27], %46 {strides = array<i32>} : memref<8x2x96xf32, #tpu.memory_space<vmem>>, vector<8x2x96xf32>,
    %c0_i32_28 = arith.constant 0 : i32
    %48 = arith.index_cast %c0_i32_28 : i32 to index
    %c0_29 = arith.constant 0 : index
    %c0_30 = arith.constant 0 : index
    %49 = vector.load %arg14[%48, %c0_29, %c0_30] : memref<8x2x96xf32, #tpu.memory_space<vmem>>, vector<1x2x96xf32>
    %50 = vector.shape_cast %49 : vector<1x2x96xf32> to vector<2x96xf32>
    %cst_31 = arith.constant dense<0.000000e+00> : vector<2x96xf32>
    %51 = tpu.matmul %9, %36, %cst_31 {dimension_numbers = #tpu.dot_dimension_numbers<[1], [0], [0], [1], [0, 0, 1, 1], [], []>} : vector<2x32xf32>, vector<32x96xf32>, vector<2x96xf32> -> vector<2x96xf32>
    %52 = arith.addf %51, %35 : vector<2x96xf32>
    %53 = vector.extract_strided_slice %50 {offsets = [0, 0], sizes = [2, 32], strides = [1, 1]} : vector<2x96xf32> to vector<2x32xf32>
    %54 = vector.extract_strided_slice %52 {offsets = [0, 0], sizes = [2, 32], strides = [1, 1]} : vector<2x96xf32> to vector<2x32xf32>
    %55 = arith.addf %53, %54 : vector<2x32xf32>
    %56 = arith.negf %55 : vector<2x32xf32>
    %57 = math.exp %56 : vector<2x32xf32>
    %cst_32 = arith.constant 1.000000e+00 : f32
    %58 = vector.broadcast %cst_32 : f32 to vector<2x32xf32>
    %59 = arith.addf %58, %57 : vector<2x32xf32>
    %60 = arith.divf %58, %59 : vector<2x32xf32>
    %61 = vector.extract_strided_slice %50 {offsets = [0, 32], sizes = [2, 32], strides = [1, 1]} : vector<2x96xf32> to vector<2x32xf32>
    %62 = vector.extract_strided_slice %52 {offsets = [0, 32], sizes = [2, 32], strides = [1, 1]} : vector<2x96xf32> to vector<2x32xf32>
    %63 = arith.addf %61, %62 : vector<2x32xf32>
    %64 = arith.negf %63 : vector<2x32xf32>
    %65 = math.exp %64 : vector<2x32xf32>
    %cst_33 = arith.constant 1.000000e+00 : f32
    %66 = vector.broadcast %cst_33 : f32 to vector<2x32xf32>
    %67 = arith.addf %66, %65 : vector<2x32xf32>
    %68 = arith.divf %66, %67 : vector<2x32xf32>
    %69 = vector.extract_strided_slice %50 {offsets = [0, 64], sizes = [2, 32], strides = [1, 1]} : vector<2x96xf32> to vector<2x32xf32>
    %70 = vector.extract_strided_slice %52 {offsets = [0, 64], sizes = [2, 32], strides = [1, 1]} : vector<2x96xf32> to vector<2x32xf32>
    %71 = arith.mulf %60, %70 : vector<2x32xf32>
    %72 = arith.addf %69, %71 : vector<2x32xf32>
    %73 = math.tanh %72 : vector<2x32xf32>
    %cst_34 = arith.constant 1.000000e+00 : f32
    %74 = vector.broadcast %cst_34 : f32 to vector<2x32xf32>
    %75 = arith.subf %74, %68 : vector<2x32xf32>
    %76 = arith.mulf %75, %73 : vector<2x32xf32>
    %77 = arith.mulf %68, %9 : vector<2x32xf32>
    %78 = arith.addf %76, %77 : vector<2x32xf32>
    %79 = vector.broadcast %c0_i32_28 : i32 to vector<2x32xi32>
    %80 = arith.cmpi slt, %79, %32 : vector<2x32xi32>
    %cst_35 = arith.constant 0.000000e+00 : f32
    %81 = vector.broadcast %cst_35 : f32 to vector<2x32xf32>
    %82 = arith.select %80, %78, %81 : vector<2x32xi1>, vector<2x32xf32>
    %83 = arith.index_cast %c0_i32_28 : i32 to index
    %c0_36 = arith.constant 0 : index
    %c0_37 = arith.constant 0 : index
    %84 = vector.load %arg15[%83, %c0_36, %c0_37] : memref<8x2x32xf32, #tpu.memory_space<vmem>>, vector<1x2x32xf32>
    %85 = vector.shape_cast %84 : vector<1x2x32xf32> to vector<2x32xf32>
    %86 = vector.shape_cast %82 : vector<2x32xf32> to vector<1x2x32xf32>
    tpu.vector_store %arg15[%83, %c0_36, %c0_37], %86 {strides = array<i32>} : memref<8x2x32xf32, #tpu.memory_space<vmem>>, vector<1x2x32xf32>,
    %87 = arith.select %80, %78, %9 : vector<2x32xi1>, vector<2x32xf32>
    %c1_i32_38 = arith.constant 1 : i32
    %88 = arith.index_cast %c1_i32_38 : i32 to index
    %c0_39 = arith.constant 0 : index
    %c0_40 = arith.constant 0 : index
    %89 = vector.load %arg14[%88, %c0_39, %c0_40] : memref<8x2x96xf32, #tpu.memory_space<vmem>>, vector<1x2x96xf32>
    %90 = vector.shape_cast %89 : vector<1x2x96xf32> to vector<2x96xf32>
    %cst_41 = arith.constant dense<0.000000e+00> : vector<2x96xf32>
    %91 = tpu.matmul %87, %36, %cst_41 {dimension_numbers = #tpu.dot_dimension_numbers<[1], [0], [0], [1], [0, 0, 1, 1], [], []>} : vector<2x32xf32>, vector<32x96xf32>, vector<2x96xf32> -> vector<2x96xf32>
    %92 = arith.addf %91, %35 : vector<2x96xf32>
    %93 = vector.extract_strided_slice %90 {offsets = [0, 0], sizes = [2, 32], strides = [1, 1]} : vector<2x96xf32> to vector<2x32xf32>
    %94 = vector.extract_strided_slice %92 {offsets = [0, 0], sizes = [2, 32], strides = [1, 1]} : vector<2x96xf32> to vector<2x32xf32>
    %95 = arith.addf %93, %94 : vector<2x32xf32>
    %96 = arith.negf %95 : vector<2x32xf32>
    %97 = math.exp %96 : vector<2x32xf32>
    %cst_42 = arith.constant 1.000000e+00 : f32
    %98 = vector.broadcast %cst_42 : f32 to vector<2x32xf32>
    %99 = arith.addf %98, %97 : vector<2x32xf32>
    %100 = arith.divf %98, %99 : vector<2x32xf32>
    %101 = vector.extract_strided_slice %90 {offsets = [0, 32], sizes = [2, 32], strides = [1, 1]} : vector<2x96xf32> to vector<2x32xf32>
    %102 = vector.extract_strided_slice %92 {offsets = [0, 32], sizes = [2, 32], strides = [1, 1]} : vector<2x96xf32> to vector<2x32xf32>
    %103 = arith.addf %101, %102 : vector<2x32xf32>
    %104 = arith.negf %103 : vector<2x32xf32>
    %105 = math.exp %104 : vector<2x32xf32>
    %cst_43 = arith.constant 1.000000e+00 : f32
    %106 = vector.broadcast %cst_43 : f32 to vector<2x32xf32>
    %107 = arith.addf %106, %105 : vector<2x32xf32>
    %108 = arith.divf %106, %107 : vector<2x32xf32>
    %109 = vector.extract_strided_slice %90 {offsets = [0, 64], sizes = [2, 32], strides = [1, 1]} : vector<2x96xf32> to vector<2x32xf32>
    %110 = vector.extract_strided_slice %92 {offsets = [0, 64], sizes = [2, 32], strides = [1, 1]} : vector<2x96xf32> to vector<2x32xf32>
    %111 = arith.mulf %100, %110 : vector<2x32xf32>
    %112 = arith.addf %109, %111 : vector<2x32xf32>
    %113 = math.tanh %112 : vector<2x32xf32>
    %cst_44 = arith.constant 1.000000e+00 : f32
    %114 = vector.broadcast %cst_44 : f32 to vector<2x32xf32>
    %115 = arith.subf %114, %108 : vector<2x32xf32>
    %116 = arith.mulf %115, %113 : vector<2x32xf32>
    %117 = arith.mulf %108, %87 : vector<2x32xf32>
    %118 = arith.addf %116, %117 : vector<2x32xf32>
    %119 = vector.broadcast %c1_i32_38 : i32 to vector<2x32xi32>
    %120 = arith.cmpi slt, %119, %32 : vector<2x32xi32>
    %cst_45 = arith.constant 0.000000e+00 : f32
    %121 = vector.broadcast %cst_45 : f32 to vector<2x32xf32>
    %122 = arith.select %120, %118, %121 : vector<2x32xi1>, vector<2x32xf32>
    %123 = arith.index_cast %c1_i32_38 : i32 to index
    %c0_46 = arith.constant 0 : index
    %c0_47 = arith.constant 0 : index
    %124 = vector.load %arg15[%123, %c0_46, %c0_47] : memref<8x2x32xf32, #tpu.memory_space<vmem>>, vector<1x2x32xf32>
    %125 = vector.shape_cast %124 : vector<1x2x32xf32> to vector<2x32xf32>
    %126 = vector.shape_cast %122 : vector<2x32xf32> to vector<1x2x32xf32>
    tpu.vector_store %arg15[%123, %c0_46, %c0_47], %126 {strides = array<i32>} : memref<8x2x32xf32, #tpu.memory_space<vmem>>, vector<1x2x32xf32>,
    %127 = arith.select %120, %118, %87 : vector<2x32xi1>, vector<2x32xf32>
    %c2_i32_48 = arith.constant 2 : i32
    %128 = arith.index_cast %c2_i32_48 : i32 to index
    %c0_49 = arith.constant 0 : index
    %c0_50 = arith.constant 0 : index
    %129 = vector.load %arg14[%128, %c0_49, %c0_50] : memref<8x2x96xf32, #tpu.memory_space<vmem>>, vector<1x2x96xf32>
    %130 = vector.shape_cast %129 : vector<1x2x96xf32> to vector<2x96xf32>
    %cst_51 = arith.constant dense<0.000000e+00> : vector<2x96xf32>
    %131 = tpu.matmul %127, %36, %cst_51 {dimension_numbers = #tpu.dot_dimension_numbers<[1], [0], [0], [1], [0, 0, 1, 1], [], []>} : vector<2x32xf32>, vector<32x96xf32>, vector<2x96xf32> -> vector<2x96xf32>
    %132 = arith.addf %131, %35 : vector<2x96xf32>
    %133 = vector.extract_strided_slice %130 {offsets = [0, 0], sizes = [2, 32], strides = [1, 1]} : vector<2x96xf32> to vector<2x32xf32>
    %134 = vector.extract_strided_slice %132 {offsets = [0, 0], sizes = [2, 32], strides = [1, 1]} : vector<2x96xf32> to vector<2x32xf32>
    %135 = arith.addf %133, %134 : vector<2x32xf32>
    %136 = arith.negf %135 : vector<2x32xf32>
    %137 = math.exp %136 : vector<2x32xf32>
    %cst_52 = arith.constant 1.000000e+00 : f32
    %138 = vector.broadcast %cst_52 : f32 to vector<2x32xf32>
    %139 = arith.addf %138, %137 : vector<2x32xf32>
    %140 = arith.divf %138, %139 : vector<2x32xf32>
    %141 = vector.extract_strided_slice %130 {offsets = [0, 32], sizes = [2, 32], strides = [1, 1]} : vector<2x96xf32> to vector<2x32xf32>
    %142 = vector.extract_strided_slice %132 {offsets = [0, 32], sizes = [2, 32], strides = [1, 1]} : vector<2x96xf32> to vector<2x32xf32>
    %143 = arith.addf %141, %142 : vector<2x32xf32>
    %144 = arith.negf %143 : vector<2x32xf32>
    %145 = math.exp %144 : vector<2x32xf32>
    %cst_53 = arith.constant 1.000000e+00 : f32
    %146 = vector.broadcast %cst_53 : f32 to vector<2x32xf32>
    %147 = arith.addf %146, %145 : vector<2x32xf32>
    %148 = arith.divf %146, %147 : vector<2x32xf32>
    %149 = vector.extract_strided_slice %130 {offsets = [0, 64], sizes = [2, 32], strides = [1, 1]} : vector<2x96xf32> to vector<2x32xf32>
    %150 = vector.extract_strided_slice %132 {offsets = [0, 64], sizes = [2, 32], strides = [1, 1]} : vector<2x96xf32> to vector<2x32xf32>
    %151 = arith.mulf %140, %150 : vector<2x32xf32>
    %152 = arith.addf %149, %151 : vector<2x32xf32>
    %153 = math.tanh %152 : vector<2x32xf32>
    %cst_54 = arith.constant 1.000000e+00 : f32
    %154 = vector.broadcast %cst_54 : f32 to vector<2x32xf32>
    %155 = arith.subf %154, %148 : vector<2x32xf32>
    %156 = arith.mulf %155, %153 : vector<2x32xf32>
    %157 = arith.mulf %148, %127 : vector<2x32xf32>
    %158 = arith.addf %156, %157 : vector<2x32xf32>
    %159 = vector.broadcast %c2_i32_48 : i32 to vector<2x32xi32>
    %160 = arith.cmpi slt, %159, %32 : vector<2x32xi32>
    %cst_55 = arith.constant 0.000000e+00 : f32
    %161 = vector.broadcast %cst_55 : f32 to vector<2x32xf32>
    %162 = arith.select %160, %158, %161 : vector<2x32xi1>, vector<2x32xf32>
    %163 = arith.index_cast %c2_i32_48 : i32 to index
    %c0_56 = arith.constant 0 : index
    %c0_57 = arith.constant 0 : index
    %164 = vector.load %arg15[%163, %c0_56, %c0_57] : memref<8x2x32xf32, #tpu.memory_space<vmem>>, vector<1x2x32xf32>
    %165 = vector.shape_cast %164 : vector<1x2x32xf32> to vector<2x32xf32>
    %166 = vector.shape_cast %162 : vector<2x32xf32> to vector<1x2x32xf32>
    tpu.vector_store %arg15[%163, %c0_56, %c0_57], %166 {strides = array<i32>} : memref<8x2x32xf32, #tpu.memory_space<vmem>>, vector<1x2x32xf32>,
    %167 = arith.select %160, %158, %127 : vector<2x32xi1>, vector<2x32xf32>
    %c3_i32 = arith.constant 3 : i32
    %168 = arith.index_cast %c3_i32 : i32 to index
    %c0_58 = arith.constant 0 : index
    %c0_59 = arith.constant 0 : index
    %169 = vector.load %arg14[%168, %c0_58, %c0_59] : memref<8x2x96xf32, #tpu.memory_space<vmem>>, vector<1x2x96xf32>
    %170 = vector.shape_cast %169 : vector<1x2x96xf32> to vector<2x96xf32>
    %cst_60 = arith.constant dense<0.000000e+00> : vector<2x96xf32>
    %171 = tpu.matmul %167, %36, %cst_60 {dimension_numbers = #tpu.dot_dimension_numbers<[1], [0], [0], [1], [0, 0, 1, 1], [], []>} : vector<2x32xf32>, vector<32x96xf32>, vector<2x96xf32> -> vector<2x96xf32>
    %172 = arith.addf %171, %35 : vector<2x96xf32>
    %173 = vector.extract_strided_slice %170 {offsets = [0, 0], sizes = [2, 32], strides = [1, 1]} : vector<2x96xf32> to vector<2x32xf32>
    %174 = vector.extract_strided_slice %172 {offsets = [0, 0], sizes = [2, 32], strides = [1, 1]} : vector<2x96xf32> to vector<2x32xf32>
    %175 = arith.addf %173, %174 : vector<2x32xf32>
    %176 = arith.negf %175 : vector<2x32xf32>
    %177 = math.exp %176 : vector<2x32xf32>
    %cst_61 = arith.constant 1.000000e+00 : f32
    %178 = vector.broadcast %cst_61 : f32 to vector<2x32xf32>
    %179 = arith.addf %178, %177 : vector<2x32xf32>
    %180 = arith.divf %178, %179 : vector<2x32xf32>
    %181 = vector.extract_strided_slice %170 {offsets = [0, 32], sizes = [2, 32], strides = [1, 1]} : vector<2x96xf32> to vector<2x32xf32>
    %182 = vector.extract_strided_slice %172 {offsets = [0, 32], sizes = [2, 32], strides = [1, 1]} : vector<2x96xf32> to vector<2x32xf32>
    %183 = arith.addf %181, %182 : vector<2x32xf32>
    %184 = arith.negf %183 : vector<2x32xf32>
    %185 = math.exp %184 : vector<2x32xf32>
    %cst_62 = arith.constant 1.000000e+00 : f32
    %186 = vector.broadcast %cst_62 : f32 to vector<2x32xf32>
    %187 = arith.addf %186, %185 : vector<2x32xf32>
    %188 = arith.divf %186, %187 : vector<2x32xf32>
    %189 = vector.extract_strided_slice %170 {offsets = [0, 64], sizes = [2, 32], strides = [1, 1]} : vector<2x96xf32> to vector<2x32xf32>
    %190 = vector.extract_strided_slice %172 {offsets = [0, 64], sizes = [2, 32], strides = [1, 1]} : vector<2x96xf32> to vector<2x32xf32>
    %191 = arith.mulf %180, %190 : vector<2x32xf32>
    %192 = arith.addf %189, %191 : vector<2x32xf32>
    %193 = math.tanh %192 : vector<2x32xf32>
    %cst_63 = arith.constant 1.000000e+00 : f32
    %194 = vector.broadcast %cst_63 : f32 to vector<2x32xf32>
    %195 = arith.subf %194, %188 : vector<2x32xf32>
    %196 = arith.mulf %195, %193 : vector<2x32xf32>
    %197 = arith.mulf %188, %167 : vector<2x32xf32>
    %198 = arith.addf %196, %197 : vector<2x32xf32>
    %199 = vector.broadcast %c3_i32 : i32 to vector<2x32xi32>
    %200 = arith.cmpi slt, %199, %32 : vector<2x32xi32>
    %cst_64 = arith.constant 0.000000e+00 : f32
    %201 = vector.broadcast %cst_64 : f32 to vector<2x32xf32>
    %202 = arith.select %200, %198, %201 : vector<2x32xi1>, vector<2x32xf32>
    %203 = arith.index_cast %c3_i32 : i32 to index
    %c0_65 = arith.constant 0 : index
    %c0_66 = arith.constant 0 : index
    %204 = vector.load %arg15[%203, %c0_65, %c0_66] : memref<8x2x32xf32, #tpu.memory_space<vmem>>, vector<1x2x32xf32>
    %205 = vector.shape_cast %204 : vector<1x2x32xf32> to vector<2x32xf32>
    %206 = vector.shape_cast %202 : vector<2x32xf32> to vector<1x2x32xf32>
    tpu.vector_store %arg15[%203, %c0_65, %c0_66], %206 {strides = array<i32>} : memref<8x2x32xf32, #tpu.memory_space<vmem>>, vector<1x2x32xf32>,
    %207 = arith.select %200, %198, %167 : vector<2x32xi1>, vector<2x32xf32>
    %c4_i32 = arith.constant 4 : i32
    %208 = arith.index_cast %c4_i32 : i32 to index
    %c0_67 = arith.constant 0 : index
    %c0_68 = arith.constant 0 : index
    %209 = vector.load %arg14[%208, %c0_67, %c0_68] : memref<8x2x96xf32, #tpu.memory_space<vmem>>, vector<1x2x96xf32>
    %210 = vector.shape_cast %209 : vector<1x2x96xf32> to vector<2x96xf32>
    %cst_69 = arith.constant dense<0.000000e+00> : vector<2x96xf32>
    %211 = tpu.matmul %207, %36, %cst_69 {dimension_numbers = #tpu.dot_dimension_numbers<[1], [0], [0], [1], [0, 0, 1, 1], [], []>} : vector<2x32xf32>, vector<32x96xf32>, vector<2x96xf32> -> vector<2x96xf32>
    %212 = arith.addf %211, %35 : vector<2x96xf32>
    %213 = vector.extract_strided_slice %210 {offsets = [0, 0], sizes = [2, 32], strides = [1, 1]} : vector<2x96xf32> to vector<2x32xf32>
    %214 = vector.extract_strided_slice %212 {offsets = [0, 0], sizes = [2, 32], strides = [1, 1]} : vector<2x96xf32> to vector<2x32xf32>
    %215 = arith.addf %213, %214 : vector<2x32xf32>
    %216 = arith.negf %215 : vector<2x32xf32>
    %217 = math.exp %216 : vector<2x32xf32>
    %cst_70 = arith.constant 1.000000e+00 : f32
    %218 = vector.broadcast %cst_70 : f32 to vector<2x32xf32>
    %219 = arith.addf %218, %217 : vector<2x32xf32>
    %220 = arith.divf %218, %219 : vector<2x32xf32>
    %221 = vector.extract_strided_slice %210 {offsets = [0, 32], sizes = [2, 32], strides = [1, 1]} : vector<2x96xf32> to vector<2x32xf32>
    %222 = vector.extract_strided_slice %212 {offsets = [0, 32], sizes = [2, 32], strides = [1, 1]} : vector<2x96xf32> to vector<2x32xf32>
    %223 = arith.addf %221, %222 : vector<2x32xf32>
    %224 = arith.negf %223 : vector<2x32xf32>
    %225 = math.exp %224 : vector<2x32xf32>
    %cst_71 = arith.constant 1.000000e+00 : f32
    %226 = vector.broadcast %cst_71 : f32 to vector<2x32xf32>
    %227 = arith.addf %226, %225 : vector<2x32xf32>
    %228 = arith.divf %226, %227 : vector<2x32xf32>
    %229 = vector.extract_strided_slice %210 {offsets = [0, 64], sizes = [2, 32], strides = [1, 1]} : vector<2x96xf32> to vector<2x32xf32>
    %230 = vector.extract_strided_slice %212 {offsets = [0, 64], sizes = [2, 32], strides = [1, 1]} : vector<2x96xf32> to vector<2x32xf32>
    %231 = arith.mulf %220, %230 : vector<2x32xf32>
    %232 = arith.addf %229, %231 : vector<2x32xf32>
    %233 = math.tanh %232 : vector<2x32xf32>
    %cst_72 = arith.constant 1.000000e+00 : f32
    %234 = vector.broadcast %cst_72 : f32 to vector<2x32xf32>
    %235 = arith.subf %234, %228 : vector<2x32xf32>
    %236 = arith.mulf %235, %233 : vector<2x32xf32>
    %237 = arith.mulf %228, %207 : vector<2x32xf32>
    %238 = arith.addf %236, %237 : vector<2x32xf32>
    %239 = vector.broadcast %c4_i32 : i32 to vector<2x32xi32>
    %240 = arith.cmpi slt, %239, %32 : vector<2x32xi32>
    %cst_73 = arith.constant 0.000000e+00 : f32
    %241 = vector.broadcast %cst_73 : f32 to vector<2x32xf32>
    %242 = arith.select %240, %238, %241 : vector<2x32xi1>, vector<2x32xf32>
    %243 = arith.index_cast %c4_i32 : i32 to index
    %c0_74 = arith.constant 0 : index
    %c0_75 = arith.constant 0 : index
    %244 = vector.load %arg15[%243, %c0_74, %c0_75] : memref<8x2x32xf32, #tpu.memory_space<vmem>>, vector<1x2x32xf32>
    %245 = vector.shape_cast %244 : vector<1x2x32xf32> to vector<2x32xf32>
    %246 = vector.shape_cast %242 : vector<2x32xf32> to vector<1x2x32xf32>
    tpu.vector_store %arg15[%243, %c0_74, %c0_75], %246 {strides = array<i32>} : memref<8x2x32xf32, #tpu.memory_space<vmem>>, vector<1x2x32xf32>,
    %247 = arith.select %240, %238, %207 : vector<2x32xi1>, vector<2x32xf32>
    %c5_i32 = arith.constant 5 : i32
    %248 = arith.index_cast %c5_i32 : i32 to index
    %c0_76 = arith.constant 0 : index
    %c0_77 = arith.constant 0 : index
    %249 = vector.load %arg14[%248, %c0_76, %c0_77] : memref<8x2x96xf32, #tpu.memory_space<vmem>>, vector<1x2x96xf32>
    %250 = vector.shape_cast %249 : vector<1x2x96xf32> to vector<2x96xf32>
    %cst_78 = arith.constant dense<0.000000e+00> : vector<2x96xf32>
    %251 = tpu.matmul %247, %36, %cst_78 {dimension_numbers = #tpu.dot_dimension_numbers<[1], [0], [0], [1], [0, 0, 1, 1], [], []>} : vector<2x32xf32>, vector<32x96xf32>, vector<2x96xf32> -> vector<2x96xf32>
    %252 = arith.addf %251, %35 : vector<2x96xf32>
    %253 = vector.extract_strided_slice %250 {offsets = [0, 0], sizes = [2, 32], strides = [1, 1]} : vector<2x96xf32> to vector<2x32xf32>
    %254 = vector.extract_strided_slice %252 {offsets = [0, 0], sizes = [2, 32], strides = [1, 1]} : vector<2x96xf32> to vector<2x32xf32>
    %255 = arith.addf %253, %254 : vector<2x32xf32>
    %256 = arith.negf %255 : vector<2x32xf32>
    %257 = math.exp %256 : vector<2x32xf32>
    %cst_79 = arith.constant 1.000000e+00 : f32
    %258 = vector.broadcast %cst_79 : f32 to vector<2x32xf32>
    %259 = arith.addf %258, %257 : vector<2x32xf32>
    %260 = arith.divf %258, %259 : vector<2x32xf32>
    %261 = vector.extract_strided_slice %250 {offsets = [0, 32], sizes = [2, 32], strides = [1, 1]} : vector<2x96xf32> to vector<2x32xf32>
    %262 = vector.extract_strided_slice %252 {offsets = [0, 32], sizes = [2, 32], strides = [1, 1]} : vector<2x96xf32> to vector<2x32xf32>
    %263 = arith.addf %261, %262 : vector<2x32xf32>
    %264 = arith.negf %263 : vector<2x32xf32>
    %265 = math.exp %264 : vector<2x32xf32>
    %cst_80 = arith.constant 1.000000e+00 : f32
    %266 = vector.broadcast %cst_80 : f32 to vector<2x32xf32>
    %267 = arith.addf %266, %265 : vector<2x32xf32>
    %268 = arith.divf %266, %267 : vector<2x32xf32>
    %269 = vector.extract_strided_slice %250 {offsets = [0, 64], sizes = [2, 32], strides = [1, 1]} : vector<2x96xf32> to vector<2x32xf32>
    %270 = vector.extract_strided_slice %252 {offsets = [0, 64], sizes = [2, 32], strides = [1, 1]} : vector<2x96xf32> to vector<2x32xf32>
    %271 = arith.mulf %260, %270 : vector<2x32xf32>
    %272 = arith.addf %269, %271 : vector<2x32xf32>
    %273 = math.tanh %272 : vector<2x32xf32>
    %cst_81 = arith.constant 1.000000e+00 : f32
    %274 = vector.broadcast %cst_81 : f32 to vector<2x32xf32>
    %275 = arith.subf %274, %268 : vector<2x32xf32>
    %276 = arith.mulf %275, %273 : vector<2x32xf32>
    %277 = arith.mulf %268, %247 : vector<2x32xf32>
    %278 = arith.addf %276, %277 : vector<2x32xf32>
    %279 = vector.broadcast %c5_i32 : i32 to vector<2x32xi32>
    %280 = arith.cmpi slt, %279, %32 : vector<2x32xi32>
    %cst_82 = arith.constant 0.000000e+00 : f32
    %281 = vector.broadcast %cst_82 : f32 to vector<2x32xf32>
    %282 = arith.select %280, %278, %281 : vector<2x32xi1>, vector<2x32xf32>
    %283 = arith.index_cast %c5_i32 : i32 to index
    %c0_83 = arith.constant 0 : index
    %c0_84 = arith.constant 0 : index
    %284 = vector.load %arg15[%283, %c0_83, %c0_84] : memref<8x2x32xf32, #tpu.memory_space<vmem>>, vector<1x2x32xf32>
    %285 = vector.shape_cast %284 : vector<1x2x32xf32> to vector<2x32xf32>
    %286 = vector.shape_cast %282 : vector<2x32xf32> to vector<1x2x32xf32>
    tpu.vector_store %arg15[%283, %c0_83, %c0_84], %286 {strides = array<i32>} : memref<8x2x32xf32, #tpu.memory_space<vmem>>, vector<1x2x32xf32>,
    %287 = arith.select %280, %278, %247 : vector<2x32xi1>, vector<2x32xf32>
    %c6_i32 = arith.constant 6 : i32
    %288 = arith.index_cast %c6_i32 : i32 to index
    %c0_85 = arith.constant 0 : index
    %c0_86 = arith.constant 0 : index
    %289 = vector.load %arg14[%288, %c0_85, %c0_86] : memref<8x2x96xf32, #tpu.memory_space<vmem>>, vector<1x2x96xf32>
    %290 = vector.shape_cast %289 : vector<1x2x96xf32> to vector<2x96xf32>
    %cst_87 = arith.constant dense<0.000000e+00> : vector<2x96xf32>
    %291 = tpu.matmul %287, %36, %cst_87 {dimension_numbers = #tpu.dot_dimension_numbers<[1], [0], [0], [1], [0, 0, 1, 1], [], []>} : vector<2x32xf32>, vector<32x96xf32>, vector<2x96xf32> -> vector<2x96xf32>
    %292 = arith.addf %291, %35 : vector<2x96xf32>
    %293 = vector.extract_strided_slice %290 {offsets = [0, 0], sizes = [2, 32], strides = [1, 1]} : vector<2x96xf32> to vector<2x32xf32>
    %294 = vector.extract_strided_slice %292 {offsets = [0, 0], sizes = [2, 32], strides = [1, 1]} : vector<2x96xf32> to vector<2x32xf32>
    %295 = arith.addf %293, %294 : vector<2x32xf32>
    %296 = arith.negf %295 : vector<2x32xf32>
    %297 = math.exp %296 : vector<2x32xf32>
    %cst_88 = arith.constant 1.000000e+00 : f32
    %298 = vector.broadcast %cst_88 : f32 to vector<2x32xf32>
    %299 = arith.addf %298, %297 : vector<2x32xf32>
    %300 = arith.divf %298, %299 : vector<2x32xf32>
    %301 = vector.extract_strided_slice %290 {offsets = [0, 32], sizes = [2, 32], strides = [1, 1]} : vector<2x96xf32> to vector<2x32xf32>
    %302 = vector.extract_strided_slice %292 {offsets = [0, 32], sizes = [2, 32], strides = [1, 1]} : vector<2x96xf32> to vector<2x32xf32>
    %303 = arith.addf %301, %302 : vector<2x32xf32>
    %304 = arith.negf %303 : vector<2x32xf32>
    %305 = math.exp %304 : vector<2x32xf32>
    %cst_89 = arith.constant 1.000000e+00 : f32
    %306 = vector.broadcast %cst_89 : f32 to vector<2x32xf32>
    %307 = arith.addf %306, %305 : vector<2x32xf32>
    %308 = arith.divf %306, %307 : vector<2x32xf32>
    %309 = vector.extract_strided_slice %290 {offsets = [0, 64], sizes = [2, 32], strides = [1, 1]} : vector<2x96xf32> to vector<2x32xf32>
    %310 = vector.extract_strided_slice %292 {offsets = [0, 64], sizes = [2, 32], strides = [1, 1]} : vector<2x96xf32> to vector<2x32xf32>
    %311 = arith.mulf %300, %310 : vector<2x32xf32>
    %312 = arith.addf %309, %311 : vector<2x32xf32>
    %313 = math.tanh %312 : vector<2x32xf32>
    %cst_90 = arith.constant 1.000000e+00 : f32
    %314 = vector.broadcast %cst_90 : f32 to vector<2x32xf32>
    %315 = arith.subf %314, %308 : vector<2x32xf32>
    %316 = arith.mulf %315, %313 : vector<2x32xf32>
    %317 = arith.mulf %308, %287 : vector<2x32xf32>
    %318 = arith.addf %316, %317 : vector<2x32xf32>
    %319 = vector.broadcast %c6_i32 : i32 to vector<2x32xi32>
    %320 = arith.cmpi slt, %319, %32 : vector<2x32xi32>
    %cst_91 = arith.constant 0.000000e+00 : f32
    %321 = vector.broadcast %cst_91 : f32 to vector<2x32xf32>
    %322 = arith.select %320, %318, %321 : vector<2x32xi1>, vector<2x32xf32>
    %323 = arith.index_cast %c6_i32 : i32 to index
    %c0_92 = arith.constant 0 : index
    %c0_93 = arith.constant 0 : index
    %324 = vector.load %arg15[%323, %c0_92, %c0_93] : memref<8x2x32xf32, #tpu.memory_space<vmem>>, vector<1x2x32xf32>
    %325 = vector.shape_cast %324 : vector<1x2x32xf32> to vector<2x32xf32>
    %326 = vector.shape_cast %322 : vector<2x32xf32> to vector<1x2x32xf32>
    tpu.vector_store %arg15[%323, %c0_92, %c0_93], %326 {strides = array<i32>} : memref<8x2x32xf32, #tpu.memory_space<vmem>>, vector<1x2x32xf32>,
    %327 = arith.select %320, %318, %287 : vector<2x32xi1>, vector<2x32xf32>
    %c7_i32 = arith.constant 7 : i32
    %328 = arith.index_cast %c7_i32 : i32 to index
    %c0_94 = arith.constant 0 : index
    %c0_95 = arith.constant 0 : index
    %329 = vector.load %arg14[%328, %c0_94, %c0_95] : memref<8x2x96xf32, #tpu.memory_space<vmem>>, vector<1x2x96xf32>
    %330 = vector.shape_cast %329 : vector<1x2x96xf32> to vector<2x96xf32>
    %cst_96 = arith.constant dense<0.000000e+00> : vector<2x96xf32>
    %331 = tpu.matmul %327, %36, %cst_96 {dimension_numbers = #tpu.dot_dimension_numbers<[1], [0], [0], [1], [0, 0, 1, 1], [], []>} : vector<2x32xf32>, vector<32x96xf32>, vector<2x96xf32> -> vector<2x96xf32>
    %332 = arith.addf %331, %35 : vector<2x96xf32>
    %333 = vector.extract_strided_slice %330 {offsets = [0, 0], sizes = [2, 32], strides = [1, 1]} : vector<2x96xf32> to vector<2x32xf32>
    %334 = vector.extract_strided_slice %332 {offsets = [0, 0], sizes = [2, 32], strides = [1, 1]} : vector<2x96xf32> to vector<2x32xf32>
    %335 = arith.addf %333, %334 : vector<2x32xf32>
    %336 = arith.negf %335 : vector<2x32xf32>
    %337 = math.exp %336 : vector<2x32xf32>
    %cst_97 = arith.constant 1.000000e+00 : f32
    %338 = vector.broadcast %cst_97 : f32 to vector<2x32xf32>
    %339 = arith.addf %338, %337 : vector<2x32xf32>
    %340 = arith.divf %338, %339 : vector<2x32xf32>
    %341 = vector.extract_strided_slice %330 {offsets = [0, 32], sizes = [2, 32], strides = [1, 1]} : vector<2x96xf32> to vector<2x32xf32>
    %342 = vector.extract_strided_slice %332 {offsets = [0, 32], sizes = [2, 32], strides = [1, 1]} : vector<2x96xf32> to vector<2x32xf32>
    %343 = arith.addf %341, %342 : vector<2x32xf32>
    %344 = arith.negf %343 : vector<2x32xf32>
    %345 = math.exp %344 : vector<2x32xf32>
    %cst_98 = arith.constant 1.000000e+00 : f32
    %346 = vector.broadcast %cst_98 : f32 to vector<2x32xf32>
    %347 = arith.addf %346, %345 : vector<2x32xf32>
    %348 = arith.divf %346, %347 : vector<2x32xf32>
    %349 = vector.extract_strided_slice %330 {offsets = [0, 64], sizes = [2, 32], strides = [1, 1]} : vector<2x96xf32> to vector<2x32xf32>
    %350 = vector.extract_strided_slice %332 {offsets = [0, 64], sizes = [2, 32], strides = [1, 1]} : vector<2x96xf32> to vector<2x32xf32>
    %351 = arith.mulf %340, %350 : vector<2x32xf32>
    %352 = arith.addf %349, %351 : vector<2x32xf32>
    %353 = math.tanh %352 : vector<2x32xf32>
    %cst_99 = arith.constant 1.000000e+00 : f32
    %354 = vector.broadcast %cst_99 : f32 to vector<2x32xf32>
    %355 = arith.subf %354, %348 : vector<2x32xf32>
    %356 = arith.mulf %355, %353 : vector<2x32xf32>
    %357 = arith.mulf %348, %327 : vector<2x32xf32>
    %358 = arith.addf %356, %357 : vector<2x32xf32>
    %359 = vector.broadcast %c7_i32 : i32 to vector<2x32xi32>
    %360 = arith.cmpi slt, %359, %32 : vector<2x32xi32>
    %cst_100 = arith.constant 0.000000e+00 : f32
    %361 = vector.broadcast %cst_100 : f32 to vector<2x32xf32>
    %362 = arith.select %360, %358, %361 : vector<2x32xi1>, vector<2x32xf32>
    %363 = arith.index_cast %c7_i32 : i32 to index
    %c0_101 = arith.constant 0 : index
    %c0_102 = arith.constant 0 : index
    %364 = vector.load %arg15[%363, %c0_101, %c0_102] : memref<8x2x32xf32, #tpu.memory_space<vmem>>, vector<1x2x32xf32>
    %365 = vector.shape_cast %364 : vector<1x2x32xf32> to vector<2x32xf32>
    %366 = vector.shape_cast %362 : vector<2x32xf32> to vector<1x2x32xf32>
    tpu.vector_store %arg15[%363, %c0_101, %c0_102], %366 {strides = array<i32>} : memref<8x2x32xf32, #tpu.memory_space<vmem>>, vector<1x2x32xf32>,
    %367 = arith.select %360, %358, %327 : vector<2x32xi1>, vector<2x32xf32>
    %c8_i32 = arith.constant 8 : i32
    %c0_103 = arith.constant 0 : index
    %c0_104 = arith.constant 0 : index
    %368 = vector.load %arg13[%c0_103, %c0_104] : memref<2x32xf32, #tpu.memory_space<vmem>>, vector<2x32xf32>
    tpu.vector_store %arg13[%c0_103, %c0_104], %367 {strides = array<i32>} : memref<2x32xf32, #tpu.memory_space<vmem>>, vector<2x32xf32>,
    %c0_105 = arith.constant 0 : index
    %c0_106 = arith.constant 0 : index
    %c0_107 = arith.constant 0 : index
    %369 = vector.load %arg15[%c0_105, %c0_106, %c0_107] : memref<8x2x32xf32, #tpu.memory_space<vmem>>, vector<1x2x32xf32>
    %370 = vector.shape_cast %369 : vector<1x2x32xf32> to vector<2x32xf32>
    %c0_108 = arith.constant 0 : index
    %c0_109 = arith.constant 0 : index
    %c0_110 = arith.constant 0 : index
    %371 = vector.load %arg16[%c0_108, %c0_109, %c0_110] : memref<2x8x32xf32, #tpu.memory_space<vmem>>, vector<2x1x32xf32>
    %372 = vector.shape_cast %371 : vector<2x1x32xf32> to vector<2x32xf32>
    %373 = vector.shape_cast %370 : vector<2x32xf32> to vector<2x1x32xf32>
    tpu.vector_store %arg16[%c0_108, %c0_109, %c0_110], %373 {strides = array<i32>} : memref<2x8x32xf32, #tpu.memory_space<vmem>>, vector<2x1x32xf32>,
    %c1 = arith.constant 1 : index
    %c0_111 = arith.constant 0 : index
    %c0_112 = arith.constant 0 : index
    %374 = vector.load %arg15[%c1, %c0_111, %c0_112] : memref<8x2x32xf32, #tpu.memory_space<vmem>>, vector<1x2x32xf32>
    %375 = vector.shape_cast %374 : vector<1x2x32xf32> to vector<2x32xf32>
    %c0_113 = arith.constant 0 : index
    %c1_114 = arith.constant 1 : index
    %c0_115 = arith.constant 0 : index
    %376 = vector.load %arg16[%c0_113, %c1_114, %c0_115] : memref<2x8x32xf32, #tpu.memory_space<vmem>>, vector<2x1x32xf32>
    %377 = vector.shape_cast %376 : vector<2x1x32xf32> to vector<2x32xf32>
    %378 = vector.shape_cast %375 : vector<2x32xf32> to vector<2x1x32xf32>
    tpu.vector_store %arg16[%c0_113, %c1_114, %c0_115], %378 {strides = array<i32>} : memref<2x8x32xf32, #tpu.memory_space<vmem>>, vector<2x1x32xf32>,
    %c2 = arith.constant 2 : index
    %c0_116 = arith.constant 0 : index
    %c0_117 = arith.constant 0 : index
    %379 = vector.load %arg15[%c2, %c0_116, %c0_117] : memref<8x2x32xf32, #tpu.memory_space<vmem>>, vector<1x2x32xf32>
    %380 = vector.shape_cast %379 : vector<1x2x32xf32> to vector<2x32xf32>
    %c0_118 = arith.constant 0 : index
    %c2_119 = arith.constant 2 : index
    %c0_120 = arith.constant 0 : index
    %381 = vector.load %arg16[%c0_118, %c2_119, %c0_120] : memref<2x8x32xf32, #tpu.memory_space<vmem>>, vector<2x1x32xf32>
    %382 = vector.shape_cast %381 : vector<2x1x32xf32> to vector<2x32xf32>
    %383 = vector.shape_cast %380 : vector<2x32xf32> to vector<2x1x32xf32>
    tpu.vector_store %arg16[%c0_118, %c2_119, %c0_120], %383 {strides = array<i32>} : memref<2x8x32xf32, #tpu.memory_space<vmem>>, vector<2x1x32xf32>,
    %c3 = arith.constant 3 : index
    %c0_121 = arith.constant 0 : index
    %c0_122 = arith.constant 0 : index
    %384 = vector.load %arg15[%c3, %c0_121, %c0_122] : memref<8x2x32xf32, #tpu.memory_space<vmem>>, vector<1x2x32xf32>
    %385 = vector.shape_cast %384 : vector<1x2x32xf32> to vector<2x32xf32>
    %c0_123 = arith.constant 0 : index
    %c3_124 = arith.constant 3 : index
    %c0_125 = arith.constant 0 : index
    %386 = vector.load %arg16[%c0_123, %c3_124, %c0_125] : memref<2x8x32xf32, #tpu.memory_space<vmem>>, vector<2x1x32xf32>
    %387 = vector.shape_cast %386 : vector<2x1x32xf32> to vector<2x32xf32>
    %388 = vector.shape_cast %385 : vector<2x32xf32> to vector<2x1x32xf32>
    tpu.vector_store %arg16[%c0_123, %c3_124, %c0_125], %388 {strides = array<i32>} : memref<2x8x32xf32, #tpu.memory_space<vmem>>, vector<2x1x32xf32>,
    %c4 = arith.constant 4 : index
    %c0_126 = arith.constant 0 : index
    %c0_127 = arith.constant 0 : index
    %389 = vector.load %arg15[%c4, %c0_126, %c0_127] : memref<8x2x32xf32, #tpu.memory_space<vmem>>, vector<1x2x32xf32>
    %390 = vector.shape_cast %389 : vector<1x2x32xf32> to vector<2x32xf32>
    %c0_128 = arith.constant 0 : index
    %c4_129 = arith.constant 4 : index
    %c0_130 = arith.constant 0 : index
    %391 = vector.load %arg16[%c0_128, %c4_129, %c0_130] : memref<2x8x32xf32, #tpu.memory_space<vmem>>, vector<2x1x32xf32>
    %392 = vector.shape_cast %391 : vector<2x1x32xf32> to vector<2x32xf32>
    %393 = vector.shape_cast %390 : vector<2x32xf32> to vector<2x1x32xf32>
    tpu.vector_store %arg16[%c0_128, %c4_129, %c0_130], %393 {strides = array<i32>} : memref<2x8x32xf32, #tpu.memory_space<vmem>>, vector<2x1x32xf32>,
    %c5 = arith.constant 5 : index
    %c0_131 = arith.constant 0 : index
    %c0_132 = arith.constant 0 : index
    %394 = vector.load %arg15[%c5, %c0_131, %c0_132] : memref<8x2x32xf32, #tpu.memory_space<vmem>>, vector<1x2x32xf32>
    %395 = vector.shape_cast %394 : vector<1x2x32xf32> to vector<2x32xf32>
    %c0_133 = arith.constant 0 : index
    %c5_134 = arith.constant 5 : index
    %c0_135 = arith.constant 0 : index
    %396 = vector.load %arg16[%c0_133, %c5_134, %c0_135] : memref<2x8x32xf32, #tpu.memory_space<vmem>>, vector<2x1x32xf32>
    %397 = vector.shape_cast %396 : vector<2x1x32xf32> to vector<2x32xf32>
    %398 = vector.shape_cast %395 : vector<2x32xf32> to vector<2x1x32xf32>
    tpu.vector_store %arg16[%c0_133, %c5_134, %c0_135], %398 {strides = array<i32>} : memref<2x8x32xf32, #tpu.memory_space<vmem>>, vector<2x1x32xf32>,
    %c6 = arith.constant 6 : index
    %c0_136 = arith.constant 0 : index
    %c0_137 = arith.constant 0 : index
    %399 = vector.load %arg15[%c6, %c0_136, %c0_137] : memref<8x2x32xf32, #tpu.memory_space<vmem>>, vector<1x2x32xf32>
    %400 = vector.shape_cast %399 : vector<1x2x32xf32> to vector<2x32xf32>
    %c0_138 = arith.constant 0 : index
    %c6_139 = arith.constant 6 : index
    %c0_140 = arith.constant 0 : index
    %401 = vector.load %arg16[%c0_138, %c6_139, %c0_140] : memref<2x8x32xf32, #tpu.memory_space<vmem>>, vector<2x1x32xf32>
    %402 = vector.shape_cast %401 : vector<2x1x32xf32> to vector<2x32xf32>
    %403 = vector.shape_cast %400 : vector<2x32xf32> to vector<2x1x32xf32>
    tpu.vector_store %arg16[%c0_138, %c6_139, %c0_140], %403 {strides = array<i32>} : memref<2x8x32xf32, #tpu.memory_space<vmem>>, vector<2x1x32xf32>,
    %c7 = arith.constant 7 : index
    %c0_141 = arith.constant 0 : index
    %c0_142 = arith.constant 0 : index
    %404 = vector.load %arg15[%c7, %c0_141, %c0_142] : memref<8x2x32xf32, #tpu.memory_space<vmem>>, vector<1x2x32xf32>
    %405 = vector.shape_cast %404 : vector<1x2x32xf32> to vector<2x32xf32>
    %c0_143 = arith.constant 0 : index
    %c7_144 = arith.constant 7 : index
    %c0_145 = arith.constant 0 : index
    %406 = vector.load %arg16[%c0_143, %c7_144, %c0_145] : memref<2x8x32xf32, #tpu.memory_space<vmem>>, vector<2x1x32xf32>
    %407 = vector.shape_cast %406 : vector<2x1x32xf32> to vector<2x32xf32>
    %408 = vector.shape_cast %405 : vector<2x32xf32> to vector<2x1x32xf32>
    tpu.vector_store %arg16[%c0_143, %c7_144, %c0_145], %408 {strides = array<i32>} : memref<2x8x32xf32, #tpu.memory_space<vmem>>, vector<2x1x32xf32>,
    %c0_i32_146 = arith.constant 0 : i32
    %409 = tpu.memref_slice %arg18[%c0_i32_146] : memref<1x!tpu.dma_semaphore, #tpu.memory_space<semaphore_mem>> -> memref<1x!tpu.dma_semaphore, #tpu.memory_space<semaphore_mem>>
    %410 = tpu.memref_squeeze %409 : memref<1x!tpu.dma_semaphore, #tpu.memory_space<semaphore_mem>> -> memref<!tpu.dma_semaphore, #tpu.memory_space<semaphore_mem>>
    tpu.wait_dma2 semaphore(%410 : memref<!tpu.dma_semaphore, #tpu.memory_space<semaphore_mem>>) src(%arg10 : memref<32x16xf32, #tpu.memory_space<any>>) dst(%arg17 : memref<32x16xf32, #tpu.memory_space<vmem>>)
    %c0_147 = arith.constant 0 : index
    %c0_148 = arith.constant 0 : index
    %c0_149 = arith.constant 0 : index
    %411 = vector.load %arg16[%c0_147, %c0_148, %c0_149] : memref<2x8x32xf32, #tpu.memory_space<vmem>>, vector<2x8x32xf32>
    %412 = vector.shape_cast %411 : vector<2x8x32xf32> to vector<16x32xf32>
    %c0_150 = arith.constant 0 : index
    %c0_151 = arith.constant 0 : index
    %413 = vector.load %arg17[%c0_150, %c0_151] : memref<32x16xf32, #tpu.memory_space<vmem>>, vector<32x16xf32>
    %cst_152 = arith.constant dense<0.000000e+00> : vector<16x16xf32>
    %414 = tpu.matmul %412, %413, %cst_152 {dimension_numbers = #tpu.dot_dimension_numbers<[1], [0], [0], [1], [0, 0, 1, 1], [], []>} : vector<16x32xf32>, vector<32x16xf32>, vector<16x16xf32> -> vector<16x16xf32>
    %c0_153 = arith.constant 0 : index
    %c0_154 = arith.constant 0 : index
    %415 = vector.load %arg11[%c0_153, %c0_154] : memref<1x16xf32, #tpu.memory_space<vmem>>, vector<1x16xf32>
    %416 = vector.broadcast %415 : vector<1x16xf32> to vector<16x16xf32>
    %417 = arith.addf %414, %416 : vector<16x16xf32>
    %cst_155 = arith.constant dense<0xFF800000> : vector<16xf32>
    %418 = vector.multi_reduction <maximumf>, %417, %cst_155 [1] : vector<16x16xf32> to vector<16xf32>
    %419 = vector.shape_cast %418 : vector<16xf32> to vector<16x1xf32>
    %420 = vector.broadcast %419 : vector<16x1xf32> to vector<16x16xf32>
    %421 = arith.subf %417, %420 : vector<16x16xf32>
    %422 = math.exp %421 : vector<16x16xf32>
    %cst_156 = arith.constant dense<0.000000e+00> : vector<16xf32>
    %423 = vector.multi_reduction <add>, %422, %cst_156 [1] : vector<16x16xf32> to vector<16xf32>
    %424 = vector.shape_cast %423 : vector<16xf32> to vector<16x1xf32>
    %425 = math.log %424 : vector<16x1xf32>
    %426 = arith.addf %425, %419 : vector<16x1xf32>
    %427 = vector.broadcast %426 : vector<16x1xf32> to vector<16x16xf32>
    %428 = arith.subf %417, %427 : vector<16x16xf32>
    %429 = vector.shape_cast %428 : vector<16x16xf32> to vector<2x8x16xf32>
    %c0_157 = arith.constant 0 : index
    %c0_158 = arith.constant 0 : index
    %c0_159 = arith.constant 0 : index
    %430 = vector.load %arg12[%c0_157, %c0_158, %c0_159] : memref<2x8x16xf32, #tpu.memory_space<vmem>>, vector<2x8x16xf32>
    tpu.vector_store %arg12[%c0_157, %c0_158, %c0_159], %429 {strides = array<i32>} : memref<2x8x16xf32, #tpu.memory_space<vmem>>, vector<2x8x16xf32>,
    return
  }
  func.func @transform_0(%arg0: i32, %arg1: memref<2xi32, #tpu.memory_space<smem>>) -> (i32, i32) {
    %c0_i32 = arith.constant 0 : i32
    %c0_i32_0 = arith.constant 0 : i32
    return %arg0, %c0_i32 : i32, i32
  }
  func.func @transform_1(%arg0: i32, %arg1: memref<2xi32, #tpu.memory_space<smem>>) -> (i32, i32, i32) {
    %c0_i32 = arith.constant 0 : i32
    %c0_i32_0 = arith.constant 0 : i32
    %c0_i32_1 = arith.constant 0 : i32
    return %c0_i32, %arg0, %c0_i32_0 : i32, i32, i32
  }
  func.func @transform_2(%arg0: i32, %arg1: memref<2xi32, #tpu.memory_space<smem>>) -> (i32, i32) {
    %c0_i32 = arith.constant 0 : i32
    %c0_i32_0 = arith.constant 0 : i32
    %c0_i32_1 = arith.constant 0 : i32
    return %c0_i32, %c0_i32_0 : i32, i32
  }
  func.func @transform_3(%arg0: i32, %arg1: memref<2xi32, #tpu.memory_space<smem>>) -> (i32, i32) {
    %c0_i32 = arith.constant 0 : i32
    %c0_i32_0 = arith.constant 0 : i32
    %c0_i32_1 = arith.constant 0 : i32
    return %c0_i32, %c0_i32_0 : i32, i32
  }
  func.func @transform_4(%arg0: i32, %arg1: memref<2xi32, #tpu.memory_space<smem>>) -> (i32, i32) {
    %c0_i32 = arith.constant 0 : i32
    %c0_i32_0 = arith.constant 0 : i32
    %c0_i32_1 = arith.constant 0 : i32
    return %c0_i32, %c0_i32_0 : i32, i32
  }
  func.func @transform_5(%arg0: i32, %arg1: memref<2xi32, #tpu.memory_space<smem>>) -> (i32, i32) {
    %c0_i32 = arith.constant 0 : i32
    %c0_i32_0 = arith.constant 0 : i32
    %c0_i32_1 = arith.constant 0 : i32
    return %c0_i32, %c0_i32_0 : i32, i32
  }
  func.func @transform_6(%arg0: i32, %arg1: memref<2xi32, #tpu.memory_space<smem>>) -> (i32, i32) {
    %c0_i32 = arith.constant 0 : i32
    %c0_i32_0 = arith.constant 0 : i32
    %c0_i32_1 = arith.constant 0 : i32
    return %c0_i32, %c0_i32_0 : i32, i32
  }
  func.func @transform_7(%arg0: i32, %arg1: memref<2xi32, #tpu.memory_space<smem>>) -> (i32, i32) {
    %c0_i32 = arith.constant 0 : i32
    %c0_i32_0 = arith.constant 0 : i32
    %c0_i32_1 = arith.constant 0 : i32
    return %c0_i32, %c0_i32_0 : i32, i32
  }
  func.func @transform_9(%arg0: i32, %arg1: memref<2xi32, #tpu.memory_space<smem>>) -> (i32, i32) {
    %c0_i32 = arith.constant 0 : i32
    %c0_i32_0 = arith.constant 0 : i32
    %c0_i32_1 = arith.constant 0 : i32
    return %c0_i32, %c0_i32_0 : i32, i32
  }
  func.func @transform_10(%arg0: i32, %arg1: memref<2xi32, #tpu.memory_space<smem>>) -> (i32, i32, i32) {
    %c0_i32 = arith.constant 0 : i32
    %c0_i32_0 = arith.constant 0 : i32
    %c0_i32_1 = arith.constant 0 : i32
    return %arg0, %c0_i32, %c0_i32_0 : i32, i32, i32
  }
  func.func @transform_11(%arg0: i32, %arg1: memref<2xi32, #tpu.memory_space<smem>>) -> (i32, i32) {
    %c0_i32 = arith.constant 0 : i32
    %c0_i32_0 = arith.constant 0 : i32
    return %arg0, %c0_i32 : i32, i32
  }
}

</mosaic_0001>

<bundles_post_ra>
// kernel: tpu_custom_call.1
= control target key start
LH: loop header
LB: loop body
LE: loop exit
PB: predicated region body
PF: predicated region fallthrough
CT: control target
= control target key end

     0   :  { %s1155_s24 = smov [#allocation8]   ;;  %s1520_s0 = inlined_call_operand.vmem [shape: s32[2], index: 0, kind: input, shape index: {}]   ;;  %s1521_s1 = inlined_call_operand.vmem [shape: f32[2,48], index: 1, kind: input, shape index: {}]   ;;  %s1522_s2 = inlined_call_operand.vmem [shape: f32[8,2,32], index: 2, kind: input, shape index: {}]   ;;  %s1523_s3 = inlined_call_operand.vmem [shape: f32[48,32], index: 3, kind: input, shape index: {}]   ;;  %s1524_s4 = inlined_call_operand.vmem [shape: f32[1,32], index: 4, kind: input, shape index: {}]   ;;  %s1525_s5 = inlined_call_operand.vmem [shape: f32[32,96], index: 5, kind: input, shape index: {}]   ;;  %s1526_s6 = inlined_call_operand.vmem [shape: f32[1,96], index: 6, kind: input, shape index: {}]   ;;  %s1527_s7 = inlined_call_operand.vmem [shape: f32[32,96], index: 7, kind: input, shape index: {}]   ;;  %s1528_s8 = inlined_call_operand.vmem [shape: f32[1,96], index: 8, kind: input, shape index: {}]   ;;  %s1529_s9 = inlined_call_operand.vmem [shape: f32[32,16], index: 9, kind: input, shape index: {}]   ;;  %s1530_s10 = inlined_call_operand.vmem [shape: f32[1,16], index: 10, kind: input, shape index: {}]   ;;  %s1531_s11 = inlined_call_operand.hbm [shape: f32[2,8,16], index: 11, kind: output, shape index: {0}]   ;;  %s1532_s12 = inlined_call_operand.hbm [shape: f32[2,32], index: 12, kind: output, shape index: {1}]  }
   0x1   :  { %s19_s23 = sshll.u32 %s1520_s0, 4  ;;  %s20_s23 = int_to_ptr.vmem [resolvable:$true] %s19_s23 }
   0x2   :  { %22 = dma.vmem_to_smem %s20_s23, 16, %s1155_s24, [#allocation7] }
   0x3   :  { %1147 = dma.done.wait [#allocation7], 16 }
   0x4   :  { %1148 = vsyncadd [#allocation7], 4294967280 }
   0x5   :  { %25 = sfence }
   0x6   :  { %26 = vsyncpa [#allocation10], 0 }
   0x7   :  { %27 = vsyncpa [#allocation12], 0  ;;  %v1234_v0 = vld [vmem:[%s1529_s9] sm:$0xff]  ;;  %v1239_v1 = vld [vmem:[%s1529_s9 + $0x8] sm:$0xff] }
   0x8   :  { %v1244_v2 = vld [vmem:[%s1529_s9 + $0x10] sm:$0xff]  ;;  %v1249_v3 = vld [vmem:[%s1529_s9 + $0x18] sm:$0xff] }
   0x9   :  { %69 = vsyncadd [#allocation6], 512  ;;  %v76_v4 = vld [vmem:[%s1523_s3 + $0x28] sm:$0xff]  ;;  %v75_v5 = vld [vmem:[%s1523_s3 + $0x20] sm:$0xff]  ;;  %vm81_vm0 = vcmask 392192   ;;  %vm176_vm1 = vcmask 261120   ;;  %v107_v61 = vlaneseq }
   0xa   :  { %95 = vmatpush.msra.mxu0 %v76_v4  ;;  %v74_v6 = vld [vmem:[%s1523_s3 + $0x18] sm:$0xff]  ;;  %v145_v8 = vld [vmem:[%s1525_s5 + $0x10] sm:$0xff]  ;;  %v72_v11 = vld [vmem:[%s1523_s3 + $0x8] sm:$0xff]  ;;  %vm218_vm2 = vcmask 779264   ;;  %s1158_s13 = smov 32   ;;  %s110_s14 = sld [smem:[#allocation8]] }
   0xb   :  { %v146_v7 = vld [vmem:[%s1525_s5 + $0x18] sm:$0xff]  ;;  %v73_v10 = vld [vmem:[%s1523_s3 + $0x10] sm:$0xff]  ;;  %v71_v12 = vld [vmem:[%s1523_s3] sm:$0xff]  ;;  %s997_s15 = sld [smem:[#allocation8 + $0x1]]  ;;  %v108_v62 = vshrl.u32 %v107_v61, 7 }
   0xc   :  { %96 = vmatpush.msra.mxu0 %v75_v5  ;;  %193 = vmatpush.msra.mxu1 %v146_v7  ;;  %v1269_v9 = vld [vmem:[%s1527_s7 + $0x18] sm:$0xff]  ;;  %v70_v13 = vld [vmem:[%s1521_s1] sm:$0x3]  ;;  %v128_v15 = vld [vmem:[%s1522_s2 + $0x2] sm:$0x3] }
   0xd   :  { %243 = vmatpush.msra.mxu2 %v1269_v9  ;;  %321 = vmatpush.msra.mxu3 %v1269_v9  ;;  %v127_v14 = vld [vmem:[%s1522_s2] sm:$0x3]  ;;  %v129_v16 = vld [vmem:[%s1522_s2 + $0x4] sm:$0x3]  ;;  %v130_v17 = vld [vmem:[%s1522_s2 + $0x6] sm:$0x3] }
   0xe   :  { %97 = vmatpush.msra.mxu0 %v74_v6  ;;  %194 = vmatpush.msra.mxu1 %v145_v8  ;;  %v135_v18 = vmax.f32 %v127_v14, 0.0  ;;  %v136_v19 = vmax.f32 %v128_v15, 0.0  ;;  %v137_v20 = vmax.f32 %v129_v16, 0.0  ;;  %v138_v21 = vmax.f32 %v130_v17, 0.0  ;;  %v144_v22 = vld [vmem:[%s1525_s5 + $0x8] sm:$0xff]  ;;  %v1303_v23 = vld [vmem:[%s1527_s7 + $0x10] sm:$0xff] }
   0xf   :  { %244 = vmatpush.msra.mxu2 %v1303_v23  ;;  %v143_v24 = vld [vmem:[%s1525_s5] sm:$0xff]  ;;  %v1312_v25 = vld [vmem:[%s1527_s7 + $0x8] sm:$0xff]  ;;  %322 = vmatpush.msra.mxu3 %v1303_v23  ;;  %vm109_vm7 = vcmp.eq.s32.totalorder %v108_v62, 0  ;;  %vm113_vm8 = vcmp.eq.s32.totalorder %v108_v62, 1 }
  0x10   :  { %98 = vmatpush.msra.mxu0 %v73_v10  ;;  %159 = vst [vmem:[#allocation1] ss:$4 sm:$0xff] %v135_v18  ;;  %195 = vmatpush.msra.mxu1 %v144_v22  ;;  %v1319_v26 = vld [vmem:[%s1527_s7] sm:$0xff]  ;;  %v111_v4 = vstv %s110_s14 }
  0x11   :  { %161 = vst [vmem:[#allocation1 + $0x1] ss:$4 sm:$0xff] %v136_v19  ;;  %245 = vmatpush.msra.mxu2 %v1312_v25  ;;  %323 = vmatpush.msra.mxu3 %v1312_v25  ;;  %v1027_v28 = vld [vmem:[%s1524_s4] ss:$0 sm:$0xff]  ;;  %v116_v5 = vstv %s997_s15  ;;  %v112_v6 = vsel %vm109_vm7, %v111_v4, 0 }
  0x12   :  { %99 = vmatpush.msra.mxu0 %v72_v11  ;;  %163 = vst [vmem:[#allocation1 + $0x2] ss:$4 sm:$0xff] %v137_v20  ;;  %196 = vmatpush.msra.mxu1 %v143_v24  ;;  %v1352_v32 = vld [vmem:[%s1526_s6] ss:$0 sm:$0xff]  ;;  %s1156_s6 = smov 64   ;;  %v117_v7 = vsel %vm113_vm8, %v116_v5, 0 }
  0x13   :  { %165 = vst [vmem:[#allocation1 + $0x3] ss:$4 sm:$0xff] %v138_v21  ;;  %246 = vmatpush.msra.mxu2 %v1319_v26  ;;  %324 = vmatpush.msra.mxu3 %v1319_v26  ;;  %v1362_v38 = vld [vmem:[%s1528_s8] ss:$0 sm:$0xff]  ;;  %s1157_s8 = smov 96   ;;  %v1368_v8 = vadd.s32 %v117_v7, %v112_v6 }
  0x14   :  { %100 = vmatpush.msra.mxu0 %v71_v12  ;;  %546 = vmatpush.msrb.mxu1 %v1269_v9 }
  0x15   :  { %996 = vmatmul.msk.f32.vlgmr.msra.gmra.mxu0 %vm81_vm0, %v70_v13  ;;  %396 = vmatpush.msrb.mxu2 %v1269_v9  ;;  %vm293_vm9 = vcmp.gt.s32.totalorder %v1368_v8, 0  ;;  %vm368_vm14 = vcmp.gt.s32.totalorder %v1368_v8, 1 }
  0x16   :  { %471 = vmatpush.msrb.mxu3 %v1269_v9  ;;  %547 = vmatpush.msrb.mxu1 %v1303_v23 }
  0x17   :  { %397 = vmatpush.msrb.mxu2 %v1303_v23 }
  0x18   :  { %472 = vmatpush.msrb.mxu3 %v1303_v23  ;;  %548 = vmatpush.msrb.mxu1 %v1312_v25 }
  0x19   :  { %398 = vmatpush.msrb.mxu2 %v1312_v25 }
  0x1a   :  { %v174_v27 = vld.sshfl [vmem:[#allocation1] sm:$0xff pattern:$0x73625140]  ;;  %473 = vmatpush.msrb.mxu3 %v1312_v25  ;;  %549 = vmatpush.msrb.mxu1 %v1319_v26 }
  0x1b   :  { %998 = vmatmul.msk.f32.vlgmr.msra.gmra.mxu1 %vm176_vm1, %v174_v27  ;;  %399 = vmatpush.msrb.mxu2 %v1319_v26 }
  0x1c   :  { %474 = vmatpush.msrb.mxu3 %v1319_v26  ;;  %621 = vmatpush.msra.mxu1 %v1269_v9 }
  0x1e   :  { %622 = vmatpush.msra.mxu1 %v1303_v23 }
  0x20   :  { %623 = vmatpush.msra.mxu1 %v1312_v25 }
  0x22   :  { %624 = vmatpush.msra.mxu1 %v1319_v26 }
  0x92   :  { %v102_v29 = vpop.f32.mrf.mxu0 }
  0x93   :  { %v103_v30 = vadd.f32 %v1027_v28, %v102_v29 }
  0x95   :  { %v105_v31 = vmax.f32 %v103_v30, 0.0 }
  0x97   :  { %1000 = vmatmul.msk.f32.vlgmr.msra.gmra.mxu2 %vm176_vm1, %v105_v31 }
  0x98   :  { %696 = vmatpush.msra.mxu2 %v1269_v9  ;;  %v198_v33 = vpop.f32.mrf.mxu1 }
  0x99   :  { %v199_v34 = vadd.f32 %v1352_v32, %v198_v33 }
  0x9a   :  { %697 = vmatpush.msra.mxu2 %v1303_v23 }
  0x9b   :  { %v206_v35 = vrot.slane %v199_v34, 2  ;;  %v207_v36 = vrot.slane %v199_v34, 4  ;;  %v208_v37 = vrot.slane %v199_v34, 6  ;;  %219 = vst.msk [vmem:[#allocation2] sm:$0x3] %vm218_vm2, %v199_v34 }
  0x9c   :  { %698 = vmatpush.msra.mxu2 %v1312_v25 }
  0x9d   :  { %220 = vst.msk [vmem:[#allocation2 + $0x2] sm:$0x3] %vm218_vm2, %v206_v35 }
  0x9e   :  { %699 = vmatpush.msra.mxu2 %v1319_v26  ;;  %221 = vst.msk [vmem:[#allocation2 + $0x4] sm:$0x3] %vm218_vm2, %v207_v36 }
  0x9f   :  { %222 = vst.msk [vmem:[#allocation2 + $0x6] sm:$0x3] %vm218_vm2, %v208_v37 }
  0xa2   :  { %v227_v41 = vld [vmem:[#allocation2] sm:$0x3] }
  0xa4   :  { %v303_v20 = vld [vmem:[#allocation2 + $0x2] sm:$0x3] }
 0x11a   :  { %v248_v39 = vpop.f32.mrf.mxu2 }
 0x11b   :  { %v249_v40 = vadd.f32 %v1362_v38, %v248_v39 }
 0x11d   :  { %272 = vrot.lane.b32.xlu0 %v249_v40, %s1156_s6  ;;  %v251_v42 = vadd.f32 %v249_v40, %v227_v41 }
 0x11f   :  { %v1001_v43 = vmul.f32 -1.442695, %v251_v42 }
 0x121   :  { %1030 = vpow2.f32 %v1001_v43 }
 0x127   :  { %v1031_v44 = vpop.eup %1030 }
 0x128   :  { %v255_v45 = vadd.f32 1.0, %v1031_v44 }
 0x12a   :  { %1032 = vrcp.f32 %v255_v45  ;;  %v267_v51 = vand.u32 2147483648, %v255_v45  ;;  %vm261_vm4 = vweird.f32 %v255_v45  ;;  %v265_v52 = vand.u32 2147483647, %v255_v45 }
 0x12c   :  { %v268_v54 = vor.u32 1.1754944e-38, %v267_v51  ;;  %vm266_vm6 = vcmp.eq.f32.partialorder %v265_v52, 8.507059e+37  ;;  %v378_v51 = vld [vmem:[#allocation2 + $0x4] sm:$0x3] }
 0x130   :  { %v1033_v46 = vpop.eup %1032 }
 0x131   :  { %v257_v47 = vmul.f32 %v1033_v46, %v255_v45  ;;  %vm262_vm3 = vweird.f32 %v1033_v46 }
 0x132   :  { %vm263_vm5 = vmor %vm261_vm4, %vm262_vm3 }
 0x133   :  { %v258_v48 = vsub.f32 1.0, %v257_v47 }
 0x135   :  { %v259_v49 = vmul.f32 %v1033_v46, %v258_v48 }
 0x137   :  { %v260_v50 = vadd.f32 %v1033_v46, %v259_v49 }
 0x139   :  { %v264_v53 = vsel %vm263_vm5, %v1033_v46, %v260_v50  ;;  %vm443_vm5 = vcmp.gt.s32.totalorder %v1368_v8, 2 }
 0x13a   :  { %v269_v56 = vsel %vm266_vm6, %v268_v54, %v264_v53 }
 0x13b   :  { %v282_v10 = vsub.f32 1.0, %v269_v56 }
 0x18f   :  { %v273_v55 = vpop.permute.xlu0 %272 }
 0x190   :  { %v275_v57 = vmul.f32 %v273_v55, %v269_v56 }
 0x192   :  { %277 = vrot.lane.b32.xlu0 %v275_v57, %s1156_s6 }
 0x204   :  { %v278_v58 = vpop.permute.xlu0 %277 }
 0x205   :  { %v280_v59 = vadd.f32 %v278_v58, %v227_v41 }
 0x207   :  { %1034 = vtanh.f32 %v280_v59 }
 0x20d   :  { %v1035_v60 = vpop.eup %1034 }
 0x20e   :  { %284 = vrot.lane.b32.xlu1 %v1035_v60, %s1157_s8 }
 0x216   :  { %288 = vrot.lane.b32.xlu1 %v105_v31, %s1158_s13 }
 0x280   :  { %v285_v63 = vpop.permute.xlu1 %284 }
 0x281   :  { %v287_v12 = vmul.f32 %v285_v63, %v282_v10 }
 0x288   :  { %v289_v11 = vpop.permute.xlu1 %288 }
 0x289   :  { %v291_v13 = vmul.f32 %v289_v11, %v269_v56 }
 0x28b   :  { %v292_v14 = vadd.f32 %v291_v13, %v287_v12 }
 0x28d   :  { %v301_v15 = vsel %vm293_vm9, %v292_v14, %v289_v11  ;;  %v1371_v16 = vsel %vm293_vm9, %v292_v14, 0.0 }
 0x28e   :  { %305 = vrot.lane.b32.xlu2 %v301_v15, %s1157_s8 }
 0x2e8   :  { %v306_v17 = vpop.permute.xlu2 %305 }
 0x2e9   :  { %1002 = vmatmul.msk.f32.vlgmr.msra.gmra.mxu3 %vm176_vm1, %v306_v17 }
 0x2ea   :  { %771 = vmatpush.msra.mxu3 %v1269_v9 }
 0x2ec   :  { %772 = vmatpush.msra.mxu3 %v1303_v23 }
 0x2ee   :  { %773 = vmatpush.msra.mxu3 %v1312_v25 }
 0x2f0   :  { %774 = vmatpush.msra.mxu3 %v1319_v26 }
 0x36c   :  { %v326_v18 = vpop.f32.mrf.mxu3 }
 0x36d   :  { %v327_v19 = vadd.f32 %v1362_v38, %v326_v18 }
 0x36f   :  { %350 = vrot.lane.b32.xlu2 %v327_v19, %s1156_s6  ;;  %v329_v21 = vadd.f32 %v327_v19, %v303_v20 }
 0x371   :  { %v1003_v22 = vmul.f32 -1.442695, %v329_v21 }
 0x373   :  { %1036 = vpow2.f32 %v1003_v22 }
 0x379   :  { %v1037_v24 = vpop.eup %1036 }
 0x37a   :  { %v333_v27 = vadd.f32 1.0, %v1037_v24 }
 0x37c   :  { %1038 = vrcp.f32 %v333_v27  ;;  %v345_v25 = vand.u32 2147483648, %v333_v27  ;;  %vm339_vm11 = vweird.f32 %v333_v27  ;;  %v343_v26 = vand.u32 2147483647, %v333_v27 }
 0x37e   :  { %v346_v33 = vor.u32 1.1754944e-38, %v345_v25  ;;  %vm344_vm13 = vcmp.eq.f32.partialorder %v343_v26, 8.507059e+37 }
 0x382   :  { %v1039_v28 = vpop.eup %1038 }
 0x383   :  { %v335_v9 = vmul.f32 %v1039_v28, %v333_v27  ;;  %vm340_vm10 = vweird.f32 %v1039_v28  ;;  %v453_v27 = vld [vmem:[#allocation2 + $0x6] sm:$0x3] }
 0x384   :  { %vm341_vm12 = vmor %vm339_vm11, %vm340_vm10  ;;  %vm518_vm10 = vcmp.gt.s32.totalorder %v1368_v8, 3 }
 0x385   :  { %v336_v29 = vsub.f32 1.0, %v335_v9 }
 0x387   :  { %v337_v23 = vmul.f32 %v1039_v28, %v336_v29 }
 0x389   :  { %v338_v30 = vadd.f32 %v1039_v28, %v337_v23 }
 0x38b   :  { %v342_v31 = vsel %vm341_vm12, %v1039_v28, %v338_v30 }
 0x38c   :  { %v347_v35 = vsel %vm344_vm13, %v346_v33, %v342_v31 }
 0x38d   :  { %v360_v41 = vsub.f32 1.0, %v347_v35  ;;  %v366_v43 = vmul.f32 %v347_v35, %v301_v15 }
 0x3c9   :  { %v351_v34 = vpop.permute.xlu2 %350 }
 0x3ca   :  { %v353_v36 = vmul.f32 %v351_v34, %v347_v35 }
 0x3cc   :  { %355 = vrot.lane.b32.xlu0 %v353_v36, %s1156_s6 }
 0x43e   :  { %v356_v37 = vpop.permute.xlu0 %355 }
 0x43f   :  { %v358_v39 = vadd.f32 %v356_v37, %v303_v20 }
 0x441   :  { %1040 = vtanh.f32 %v358_v39 }
 0x447   :  { %v1041_v40 = vpop.eup %1040 }
 0x448   :  { %362 = vrot.lane.b32.xlu1 %v1041_v40, %s1157_s8 }
 0x4ba   :  { %v363_v42 = vpop.permute.xlu1 %362 }
 0x4bb   :  { %v365_v44 = vmul.f32 %v363_v42, %v360_v41 }
 0x4bd   :  { %v367_v45 = vadd.f32 %v366_v43, %v365_v44 }
 0x4bf   :  { %v376_v46 = vsel %vm368_vm14, %v367_v45, %v301_v15  ;;  %v1384_v47 = vsel %vm368_vm14, %v367_v45, 0.0  ;;  %v131_v45 = vld [vmem:[%s1522_s2 + $0x8] sm:$0x3]  ;;  %vm593_vm14 = vcmp.gt.s32.totalorder %v1368_v8, 4 }
 0x4c0   :  { %380 = vrot.lane.b32.xlu2 %v376_v46, %s1157_s8 }
 0x51a   :  { %v381_v48 = vpop.permute.xlu2 %380 }
 0x51b   :  { %1004 = vmatmul.msk.f32.vlgmr.msrb.gmra.mxu2 %vm176_vm1, %v381_v48  ;;  %v133_v48 = vld [vmem:[%s1522_s2 + $0xc] sm:$0x3] }
 0x59e   :  { %v401_v49 = vpop.f32.mrf.mxu2 }
 0x59f   :  { %v402_v50 = vadd.f32 %v1362_v38, %v401_v49  ;;  %v134_v49 = vld [vmem:[%s1522_s2 + $0xe] sm:$0x3] }
 0x5a1   :  { %425 = vrot.lane.b32.xlu0 %v402_v50, %s1156_s6  ;;  %v404_v52 = vadd.f32 %v402_v50, %v378_v51  ;;  %v139_v50 = vmax.f32 %v131_v45, 0.0 }
 0x5a3   :  { %v1005_v53 = vmul.f32 -1.442695, %v404_v52  ;;  %v141_v52 = vmax.f32 %v133_v48, 0.0  ;;  %167 = vst [vmem:[#allocation1 + $0x20] ss:$4 sm:$0xff] %v139_v50 }
 0x5a5   :  { %1042 = vpow2.f32 %v1005_v53  ;;  %v142_v53 = vmax.f32 %v134_v49, 0.0  ;;  %171 = vst [vmem:[#allocation1 + $0x22] ss:$4 sm:$0xff] %v141_v52 }
 0x5a7   :  { %173 = vst [vmem:[#allocation1 + $0x23] ss:$4 sm:$0xff] %v142_v53 }
 0x5ab   :  { %v1043_v54 = vpop.eup %1042 }
 0x5ac   :  { %v408_v55 = vadd.f32 1.0, %v1043_v54 }
 0x5ae   :  { %1044 = vrcp.f32 %v408_v55  ;;  %v420_v61 = vand.u32 2147483648, %v408_v55  ;;  %vm414_vm0 = vweird.f32 %v408_v55  ;;  %v418_v62 = vand.u32 2147483647, %v408_v55 }
 0x5b0   :  { %v421_v4 = vor.u32 1.1754944e-38, %v420_v61  ;;  %vm419_vm4 = vcmp.eq.f32.partialorder %v418_v62, 8.507059e+37 }
 0x5b4   :  { %v1045_v56 = vpop.eup %1044 }
 0x5b5   :  { %v410_v57 = vmul.f32 %v1045_v56, %v408_v55  ;;  %vm415_vm15 = vweird.f32 %v1045_v56 }
 0x5b6   :  { %vm416_vm3 = vmor %vm414_vm0, %vm415_vm15 }
 0x5b7   :  { %v411_v58 = vsub.f32 1.0, %v410_v57 }
 0x5b9   :  { %v412_v59 = vmul.f32 %v1045_v56, %v411_v58 }
 0x5bb   :  { %v413_v60 = vadd.f32 %v1045_v56, %v412_v59 }
 0x5bd   :  { %v417_v63 = vsel %vm416_vm3, %v1045_v56, %v413_v60 }
 0x5be   :  { %v422_v6 = vsel %vm419_vm4, %v421_v4, %v417_v63 }
 0x5bf   :  { %v435_v13 = vsub.f32 1.0, %v422_v6  ;;  %v441_v15 = vmul.f32 %v422_v6, %v376_v46 }
 0x613   :  { %v426_v5 = vpop.permute.xlu0 %425 }
 0x614   :  { %v428_v7 = vmul.f32 %v426_v5, %v422_v6 }
 0x616   :  { %430 = vrot.lane.b32.xlu1 %v428_v7, %s1156_s6 }
 0x688   :  { %v431_v10 = vpop.permute.xlu1 %430 }
 0x689   :  { %v433_v11 = vadd.f32 %v431_v10, %v378_v51 }
 0x68b   :  { %1046 = vtanh.f32 %v433_v11 }
 0x691   :  { %v1047_v12 = vpop.eup %1046 }
 0x692   :  { %437 = vrot.lane.b32.xlu2 %v1047_v12, %s1157_s8 }
 0x6ec   :  { %v438_v14 = vpop.permute.xlu2 %437 }
 0x6ed   :  { %v440_v17 = vmul.f32 %v438_v14, %v435_v13 }
 0x6ef   :  { %v442_v18 = vadd.f32 %v441_v15, %v440_v17 }
 0x6f1   :  { %v451_v19 = vsel %vm443_vm5, %v442_v18, %v376_v46  ;;  %v1393_v20 = vsel %vm443_vm5, %v442_v18, 0.0  ;;  %v132_v46 = vld [vmem:[%s1522_s2 + $0xa] sm:$0x3]  ;;  %vm668_vm5 = vcmp.gt.s32.totalorder %v1368_v8, 5 }
 0x6f2   :  { %455 = vrot.lane.b32.xlu0 %v451_v19, %s1157_s8  ;;  %v140_v51 = vmax.f32 %v132_v46, 0.0 }
 0x6f4   :  { %169 = vst [vmem:[#allocation1 + $0x21] ss:$4 sm:$0xff] %v140_v51 }
 0x6fb   :  { %v175_v54 = vld.sshfl [vmem:[#allocation1 + $0x20] sm:$0xff pattern:$0x73625140] }
 0x6fc   :  { %999 = vmatmul.msk.f32.gmra.mxu1 %vm176_vm1, %v175_v54 }
 0x764   :  { %v456_v21 = vpop.permute.xlu0 %455 }
 0x765   :  { %1006 = vmatmul.msk.f32.vlgmr.msrb.gmra.mxu3 %vm176_vm1, %v456_v21 }
 0x779   :  { %v201_v62 = vpop.f32.mrf.mxu1 }
 0x77a   :  { %v202_v63 = vadd.f32 %v1352_v32, %v201_v62 }
 0x77c   :  { %v209_v4 = vrot.slane %v202_v63, 2  ;;  %v210_v5 = vrot.slane %v202_v63, 4  ;;  %v211_v6 = vrot.slane %v202_v63, 6  ;;  %223 = vst.msk [vmem:[#allocation2 + $0x8] sm:$0x3] %vm218_vm2, %v202_v63 }
 0x77e   :  { %224 = vst.msk [vmem:[#allocation2 + $0xa] sm:$0x3] %vm218_vm2, %v209_v4 }
 0x77f   :  { %225 = vst.msk [vmem:[#allocation2 + $0xc] sm:$0x3] %vm218_vm2, %v210_v5 }
 0x780   :  { %226 = vst.msk [vmem:[#allocation2 + $0xe] sm:$0x3] %vm218_vm2, %v211_v6 }
 0x783   :  { %v528_v32 = vld [vmem:[#allocation2 + $0x8] sm:$0x3] }
 0x7e8   :  { %v476_v22 = vpop.f32.mrf.mxu3 }
 0x7e9   :  { %v477_v24 = vadd.f32 %v1362_v38, %v476_v22 }
 0x7eb   :  { %500 = vrot.lane.b32.xlu1 %v477_v24, %s1156_s6  ;;  %v479_v28 = vadd.f32 %v477_v24, %v453_v27 }
 0x7ed   :  { %v1007_v9 = vmul.f32 -1.442695, %v479_v28 }
 0x7ef   :  { %1048 = vpow2.f32 %v1007_v9 }
 0x7f5   :  { %v1049_v29 = vpop.eup %1048 }
 0x7f6   :  { %v483_v23 = vadd.f32 1.0, %v1049_v29 }
 0x7f8   :  { %1050 = vrcp.f32 %v483_v23  ;;  %v495_v34 = vand.u32 2147483648, %v483_v23  ;;  %vm489_vm7 = vweird.f32 %v483_v23  ;;  %v493_v35 = vand.u32 2147483647, %v483_v23 }
 0x7fa   :  { %v496_v37 = vor.u32 1.1754944e-38, %v495_v34  ;;  %vm494_vm9 = vcmp.eq.f32.partialorder %v493_v35, 8.507059e+37 }
 0x7fe   :  { %v1051_v30 = vpop.eup %1050 }
 0x7ff   :  { %v485_v25 = vmul.f32 %v1051_v30, %v483_v23  ;;  %vm490_vm6 = vweird.f32 %v1051_v30 }
 0x800   :  { %vm491_vm8 = vmor %vm489_vm7, %vm490_vm6 }
 0x801   :  { %v486_v26 = vsub.f32 1.0, %v485_v25 }
 0x803   :  { %v487_v31 = vmul.f32 %v1051_v30, %v486_v26 }
 0x805   :  { %v488_v33 = vadd.f32 %v1051_v30, %v487_v31 }
 0x807   :  { %v492_v36 = vsel %vm491_vm8, %v1051_v30, %v488_v33 }
 0x808   :  { %v497_v40 = vsel %vm494_vm9, %v496_v37, %v492_v36 }
 0x809   :  { %v510_v55 = vsub.f32 1.0, %v497_v40  ;;  %v516_v57 = vmul.f32 %v497_v40, %v451_v19 }
 0x85d   :  { %v501_v39 = vpop.permute.xlu1 %500 }
 0x85e   :  { %v503_v41 = vmul.f32 %v501_v39, %v497_v40 }
 0x860   :  { %505 = vrot.lane.b32.xlu2 %v503_v41, %s1156_s6 }
 0x8ba   :  { %v506_v42 = vpop.permute.xlu2 %505 }
 0x8bb   :  { %v508_v43 = vadd.f32 %v506_v42, %v453_v27 }
 0x8bd   :  { %1052 = vtanh.f32 %v508_v43 }
 0x8c3   :  { %v1053_v44 = vpop.eup %1052 }
 0x8c4   :  { %512 = vrot.lane.b32.xlu0 %v1053_v44, %s1157_s8  ;;  %v603_v44 = vld [vmem:[#allocation2 + $0xa] sm:$0x3] }
 0x936   :  { %v513_v56 = vpop.permute.xlu0 %512 }
 0x937   :  { %v515_v58 = vmul.f32 %v513_v56, %v510_v55 }
 0x939   :  { %v517_v59 = vadd.f32 %v516_v57, %v515_v58 }
 0x93b   :  { %v526_v60 = vsel %vm518_vm10, %v517_v59, %v451_v19  ;;  %v1415_v61 = vsel %vm518_vm10, %v517_v59, 0.0  ;;  %vm743_vm10 = vcmp.gt.s32.totalorder %v1368_v8, 6 }
 0x93c   :  { %530 = vrot.lane.b32.xlu1 %v526_v60, %s1157_s8 }
 0x9ae   :  { %v531_v7 = vpop.permute.xlu1 %530 }
 0x9af   :  { %1008 = vmatmul.msk.f32.vlgmr.msrb.gmra.mxu1 %vm176_vm1, %v531_v7 }
 0xa2c   :  { %v551_v10 = vpop.f32.mrf.mxu1 }
 0xa2d   :  { %v552_v11 = vadd.f32 %v1362_v38, %v551_v10 }
 0xa2f   :  { %575 = vrot.lane.b32.xlu2 %v552_v11, %s1156_s6  ;;  %v554_v12 = vadd.f32 %v552_v11, %v528_v32 }
 0xa31   :  { %v1009_v13 = vmul.f32 -1.442695, %v554_v12 }
 0xa33   :  { %1054 = vpow2.f32 %v1009_v13 }
 0xa39   :  { %v1055_v14 = vpop.eup %1054 }
 0xa3a   :  { %v558_v15 = vadd.f32 1.0, %v1055_v14 }
 0xa3c   :  { %1056 = vrcp.f32 %v558_v15  ;;  %v570_v24 = vand.u32 2147483648, %v558_v15  ;;  %vm564_vm11 = vweird.f32 %v558_v15  ;;  %v568_v27 = vand.u32 2147483647, %v558_v15 }
 0xa3e   :  { %v571_v9 = vor.u32 1.1754944e-38, %v570_v24  ;;  %vm569_vm13 = vcmp.eq.f32.partialorder %v568_v27, 8.507059e+37 }
 0xa42   :  { %v1057_v17 = vpop.eup %1056 }
 0xa43   :  { %v560_v18 = vmul.f32 %v1057_v17, %v558_v15  ;;  %vm565_vm2 = vweird.f32 %v1057_v17 }
 0xa44   :  { %vm566_vm12 = vmor %vm564_vm11, %vm565_vm2 }
 0xa45   :  { %v561_v19 = vsub.f32 1.0, %v560_v18  ;;  %v678_v18 = vld [vmem:[#allocation2 + $0xc] sm:$0x3] }
 0xa47   :  { %v562_v21 = vmul.f32 %v1057_v17, %v561_v19 }
 0xa49   :  { %v563_v22 = vadd.f32 %v1057_v17, %v562_v21 }
 0xa4b   :  { %v567_v28 = vsel %vm566_vm12, %v1057_v17, %v563_v22 }
 0xa4c   :  { %v572_v23 = vsel %vm569_vm13, %v571_v9, %v567_v28 }
 0xa4d   :  { %v585_v33 = vsub.f32 1.0, %v572_v23  ;;  %v591_v35 = vmul.f32 %v572_v23, %v526_v60 }
 0xa89   :  { %v576_v29 = vpop.permute.xlu2 %575 }
 0xa8a   :  { %v578_v30 = vmul.f32 %v576_v29, %v572_v23 }
 0xa8c   :  { %580 = vrot.lane.b32.xlu0 %v578_v30, %s1156_s6 }
 0xafe   :  { %v581_v25 = vpop.permute.xlu0 %580 }
 0xaff   :  { %v583_v26 = vadd.f32 %v581_v25, %v528_v32 }
 0xb01   :  { %1058 = vtanh.f32 %v583_v26 }
 0xb07   :  { %v1059_v31 = vpop.eup %1058 }
 0xb08   :  { %587 = vrot.lane.b32.xlu1 %v1059_v31, %s1157_s8 }
 0xb7a   :  { %v588_v34 = vpop.permute.xlu1 %587 }
 0xb7b   :  { %v590_v36 = vmul.f32 %v588_v34, %v585_v33 }
 0xb7d   :  { %v592_v37 = vadd.f32 %v591_v35, %v590_v36 }
 0xb7f   :  { %v601_v39 = vsel %vm593_vm14, %v592_v37, %v526_v60  ;;  %v1429_v40 = vsel %vm593_vm14, %v592_v37, 0.0  ;;  %vm299_vm14 = vcmask 254976  }
 0xb80   :  { %605 = vrot.lane.b32.xlu2 %v601_v39, %s1157_s8 }
 0xbda   :  { %v606_v41 = vpop.permute.xlu2 %605 }
 0xbdb   :  { %1010 = vmatmul.msk.f32.vlgmr.msra.gmra.mxu1 %vm176_vm1, %v606_v41 }
 0xc58   :  { %v626_v42 = vpop.f32.mrf.mxu1 }
 0xc59   :  { %v627_v43 = vadd.f32 %v1362_v38, %v626_v42 }
 0xc5b   :  { %650 = vrot.lane.b32.xlu0 %v627_v43, %s1156_s6  ;;  %v629_v45 = vadd.f32 %v627_v43, %v603_v44 }
 0xc5d   :  { %v1011_v46 = vmul.f32 -1.442695, %v629_v45 }
 0xc5f   :  { %1060 = vpow2.f32 %v1011_v46 }
 0xc65   :  { %v1061_v48 = vpop.eup %1060 }
 0xc66   :  { %v633_v49 = vadd.f32 1.0, %v1061_v48 }
 0xc68   :  { %1062 = vrcp.f32 %v633_v49  ;;  %v645_v55 = vand.u32 2147483648, %v633_v49  ;;  %vm639_vm0 = vweird.f32 %v633_v49  ;;  %v643_v56 = vand.u32 2147483647, %v633_v49 }
 0xc6a   :  { %v646_v58 = vor.u32 1.1754944e-38, %v645_v55  ;;  %vm644_vm4 = vcmp.eq.f32.partialorder %v643_v56, 8.507059e+37 }
 0xc6e   :  { %v1063_v50 = vpop.eup %1062 }
 0xc6f   :  { %v635_v51 = vmul.f32 %v1063_v50, %v633_v49  ;;  %vm640_vm15 = vweird.f32 %v1063_v50 }
 0xc70   :  { %vm641_vm3 = vmor %vm639_vm0, %vm640_vm15  ;;  %vm836_vm15 = vcmask 253952   ;;  %vm818_vm0 = vcmp.gt.s32.totalorder %v1368_v8, 7 }
 0xc71   :  { %v636_v52 = vsub.f32 1.0, %v635_v51 }
 0xc73   :  { %v637_v53 = vmul.f32 %v1063_v50, %v636_v52  ;;  %v753_v52 = vld [vmem:[#allocation2 + $0xe] sm:$0x3] }
 0xc75   :  { %v638_v54 = vadd.f32 %v1063_v50, %v637_v53 }
 0xc77   :  { %v642_v57 = vsel %vm641_vm3, %v1063_v50, %v638_v54 }
 0xc78   :  { %v647_v60 = vsel %vm644_vm4, %v646_v58, %v642_v57 }
 0xc79   :  { %v660_v6 = vsub.f32 1.0, %v647_v60  ;;  %v666_v10 = vmul.f32 %v647_v60, %v601_v39 }
 0xccd   :  { %v651_v59 = vpop.permute.xlu0 %650 }
 0xcce   :  { %v653_v62 = vmul.f32 %v651_v59, %v647_v60 }
 0xcd0   :  { %655 = vrot.lane.b32.xlu1 %v653_v62, %s1156_s6 }
 0xd42   :  { %v656_v63 = vpop.permute.xlu1 %655 }
 0xd43   :  { %v658_v4 = vadd.f32 %v656_v63, %v603_v44 }
 0xd45   :  { %1064 = vtanh.f32 %v658_v4 }
 0xd4b   :  { %v1065_v5 = vpop.eup %1064 }
 0xd4c   :  { %662 = vrot.lane.b32.xlu2 %v1065_v5, %s1157_s8 }
 0xda6   :  { %v663_v7 = vpop.permute.xlu2 %662 }
 0xda7   :  { %v665_v11 = vmul.f32 %v663_v7, %v660_v6 }
 0xda9   :  { %v667_v32 = vadd.f32 %v666_v10, %v665_v11 }
 0xdab   :  { %v676_v12 = vsel %vm668_vm5, %v667_v32, %v601_v39  ;;  %v1438_v13 = vsel %vm668_vm5, %v667_v32, 0.0 }
 0xdac   :  { %680 = vrot.lane.b32.xlu0 %v676_v12, %s1157_s8 }
 0xe1e   :  { %v681_v14 = vpop.permute.xlu0 %680 }
 0xe1f   :  { %1012 = vmatmul.msk.f32.vlgmr.msra.gmra.mxu2 %vm176_vm1, %v681_v14 }
 0xea2   :  { %v701_v15 = vpop.f32.mrf.mxu2 }
 0xea3   :  { %v702_v17 = vadd.f32 %v1362_v38, %v701_v15 }
 0xea5   :  { %725 = vrot.lane.b32.xlu1 %v702_v17, %s1156_s6  ;;  %v704_v19 = vadd.f32 %v702_v17, %v678_v18 }
 0xea7   :  { %v1013_v21 = vmul.f32 -1.442695, %v704_v19 }
 0xea9   :  { %1066 = vpow2.f32 %v1013_v21 }
 0xeaf   :  { %v1067_v22 = vpop.eup %1066 }
 0xeb0   :  { %v708_v24 = vadd.f32 1.0, %v1067_v22 }
 0xeb2   :  { %1068 = vrcp.f32 %v708_v24  ;;  %v720_v30 = vand.u32 2147483648, %v708_v24  ;;  %vm714_vm7 = vweird.f32 %v708_v24  ;;  %v718_v25 = vand.u32 2147483647, %v708_v24 }
 0xeb4   :  { %v721_v31 = vor.u32 1.1754944e-38, %v720_v30  ;;  %vm719_vm9 = vcmp.eq.f32.partialorder %v718_v25, 8.507059e+37 }
 0xeb8   :  { %v1069_v27 = vpop.eup %1068 }
 0xeb9   :  { %v710_v28 = vmul.f32 %v1069_v27, %v708_v24  ;;  %vm715_vm6 = vweird.f32 %v1069_v27 }
 0xeba   :  { %vm716_vm8 = vmor %vm714_vm7, %vm715_vm6 }
 0xebb   :  { %v711_v9 = vsub.f32 1.0, %v710_v28 }
 0xebd   :  { %v712_v29 = vmul.f32 %v1069_v27, %v711_v9 }
 0xebf   :  { %v713_v23 = vadd.f32 %v1069_v27, %v712_v29 }
 0xec1   :  { %v717_v26 = vsel %vm716_vm8, %v1069_v27, %v713_v23 }
 0xec2   :  { %v722_v34 = vsel %vm719_vm9, %v721_v31, %v717_v26 }
 0xec3   :  { %v735_v41 = vsub.f32 1.0, %v722_v34  ;;  %v741_v43 = vmul.f32 %v722_v34, %v676_v12 }
 0xf17   :  { %v726_v33 = vpop.permute.xlu1 %725 }
 0xf18   :  { %v728_v35 = vmul.f32 %v726_v33, %v722_v34 }
 0xf1a   :  { %730 = vrot.lane.b32.xlu2 %v728_v35, %s1156_s6 }
 0xf74   :  { %v731_v36 = vpop.permute.xlu2 %730 }
 0xf75   :  { %v733_v37 = vadd.f32 %v731_v36, %v678_v18 }
 0xf77   :  { %1070 = vtanh.f32 %v733_v37 }
 0xf7d   :  { %v1071_v39 = vpop.eup %1070 }
 0xf7e   :  { %737 = vrot.lane.b32.xlu0 %v1071_v39, %s1157_s8 }
 0xff0   :  { %v738_v42 = vpop.permute.xlu0 %737 }
 0xff1   :  { %v740_v44 = vmul.f32 %v738_v42, %v735_v41 }
 0xff3   :  { %v742_v45 = vadd.f32 %v741_v43, %v740_v44 }
 0xff5   :  { %v1447_v46 = vsel %vm743_vm10, %v742_v45, %v676_v12  ;;  %v744_v48 = vsel %vm743_vm10, %v742_v45, 0.0 }
 0xff6   :  { %755 = vrot.lane.b32.xlu1 %v1447_v46, %s1157_s8 }
0x1068   :  { %v756_v49 = vpop.permute.xlu1 %755 }
0x1069   :  { %1014 = vmatmul.msk.f32.vlgmr.msra.gmra.mxu3 %vm176_vm1, %v756_v49 }
0x10ec   :  { %v776_v50 = vpop.f32.mrf.mxu3 }
0x10ed   :  { %v777_v51 = vadd.f32 %v1362_v38, %v776_v50 }
0x10ef   :  { %800 = vrot.lane.b32.xlu2 %v777_v51, %s1156_s6  ;;  %v779_v53 = vadd.f32 %v777_v51, %v753_v52 }
0x10f1   :  { %v1015_v54 = vmul.f32 -1.442695, %v779_v53 }
0x10f3   :  { %1072 = vpow2.f32 %v1015_v54 }
0x10f7   :  { %296 = vrot.lane.b32.xlu2 %v1371_v16, %s1157_s8 }
0x10f9   :  { %v1073_v55 = vpop.eup %1072 }
0x10fa   :  { %v783_v56 = vadd.f32 1.0, %v1073_v55 }
0x10fc   :  { %1074 = vrcp.f32 %v783_v56  ;;  %v795_v62 = vand.u32 2147483648, %v783_v56  ;;  %vm789_vm11 = vweird.f32 %v783_v56  ;;  %v793_v16 = vand.u32 2147483647, %v783_v56 }
0x10fe   :  { %v796_v63 = vor.u32 1.1754944e-38, %v795_v62  ;;  %vm794_vm13 = vcmp.eq.f32.partialorder %v793_v16, 8.507059e+37 }
0x10ff   :  { %521 = vrot.lane.b32.xlu2 %v1415_v61, %s1157_s8 }
0x1102   :  { %v1075_v57 = vpop.eup %1074 }
0x1103   :  { %v785_v58 = vmul.f32 %v1075_v57, %v783_v56  ;;  %vm790_vm2 = vweird.f32 %v1075_v57 }
0x1104   :  { %vm791_vm12 = vmor %vm789_vm11, %vm790_vm2 }
0x1105   :  { %v786_v38 = vsub.f32 1.0, %v785_v58 }
0x1107   :  { %746 = vrot.lane.b32.xlu2 %v744_v48, %s1157_s8  ;;  %v787_v59 = vmul.f32 %v1075_v57, %v786_v38 }
0x1109   :  { %v788_v60 = vadd.f32 %v1075_v57, %v787_v59 }
0x110b   :  { %v792_v61 = vsel %vm791_vm12, %v1075_v57, %v788_v60 }
0x110c   :  { %v797_v5 = vsel %vm794_vm13, %v796_v63, %v792_v61 }
0x110d   :  { %v810_v29 = vsub.f32 1.0, %v797_v5  ;;  %v816_v30 = vmul.f32 %v797_v5, %v1447_v46 }
0x1149   :  { %v801_v4 = vpop.permute.xlu2 %800 }
0x114a   :  { %v803_v6 = vmul.f32 %v801_v4, %v797_v5 }
0x114c   :  { %805 = vrot.lane.b32.xlu0 %v803_v6, %s1156_s6 }
0x1151   :  { %v297_v7 = vpop.permute.xlu2 %296 }
0x1152   :  { %300 = vst.msk [vmem:[#allocation3] sm:$0x3] %vm299_vm14, %v297_v7 }
0x1154   :  { %371 = vrot.lane.b32.xlu0 %v1384_v47, %s1157_s8 }
0x1159   :  { %v832_v10 = vld [vmem:[#allocation3] sm:$0x3]  ;;  %v522_v11 = vpop.permute.xlu2 %521 }
0x115a   :  { %v834_v32 = vrot.slane %v832_v10, 1  ;;  %837 = vst.msk [vmem:[#allocation4] sm:$0x1] %vm836_vm15, %v832_v10 }
0x115b   :  { %525 = vst.msk [vmem:[#allocation3 + $0x6] sm:$0x3] %vm299_vm14, %v522_v11 }
0x115c   :  { %838 = vst.msk [vmem:[#allocation4 + $0x8] sm:$0x1] %vm836_vm15, %v834_v32  ;;  %596 = vrot.lane.b32.xlu0 %v1429_v40, %s1157_s8 }
0x1161   :  { %v747_v12 = vpop.permute.xlu2 %746 }
0x1162   :  { %v851_v14 = vld [vmem:[#allocation3 + $0x6] sm:$0x3]  ;;  %750 = vst.msk [vmem:[#allocation3 + $0xc] sm:$0x3] %vm299_vm14, %v747_v12 }
0x1163   :  { %v853_v15 = vrot.slane %v851_v14, 1  ;;  %855 = vst.msk [vmem:[#allocation4 + $0x3] sm:$0x1] %vm836_vm15, %v851_v14 }
0x1165   :  { %856 = vst.msk [vmem:[#allocation4 + $0xb] sm:$0x1] %vm836_vm15, %v853_v15 }
0x1169   :  { %v869_v47 = vld [vmem:[#allocation3 + $0xc] sm:$0x3] }
0x116a   :  { %v871_v17 = vrot.slane %v869_v47, 1  ;;  %873 = vst.msk [vmem:[#allocation4 + $0x6] sm:$0x1] %vm836_vm15, %v869_v47 }
0x116c   :  { %874 = vst.msk [vmem:[#allocation4 + $0xe] sm:$0x1] %vm836_vm15, %v871_v17 }
0x11be   :  { %v806_v18 = vpop.permute.xlu0 %805 }
0x11bf   :  { %v808_v19 = vadd.f32 %v806_v18, %v753_v52 }
0x11c1   :  { %1076 = vtanh.f32 %v808_v19 }
0x11c6   :  { %v372_v21 = vpop.permute.xlu0 %371 }
0x11c7   :  { %v1077_v40 = vpop.eup %1076  ;;  %375 = vst.msk [vmem:[#allocation3 + $0x2] sm:$0x3] %vm299_vm14, %v372_v21 }
0x11c8   :  { %812 = vrot.lane.b32.xlu1 %v1077_v40, %s1157_s8 }
0x11ce   :  { %v839_v22 = vld [vmem:[#allocation3 + $0x2] sm:$0x3]  ;;  %v597_v24 = vpop.permute.xlu0 %596 }
0x11cf   :  { %v841_v27 = vrot.slane %v839_v22, 1  ;;  %843 = vst.msk [vmem:[#allocation4 + $0x1] sm:$0x1] %vm836_vm15, %v839_v22 }
0x11d0   :  { %600 = vst.msk [vmem:[#allocation3 + $0x8] sm:$0x3] %vm299_vm14, %v597_v24  ;;  %446 = vrot.lane.b32.xlu1 %v1393_v20, %s1157_s8 }
0x11d1   :  { %844 = vst.msk [vmem:[#allocation4 + $0x9] sm:$0x1] %vm836_vm15, %v841_v27 }
0x11d7   :  { %v857_v28 = vld [vmem:[#allocation3 + $0x8] sm:$0x3] }
0x11d8   :  { %v859_v9 = vrot.slane %v857_v28, 1  ;;  %861 = vst.msk [vmem:[#allocation4 + $0x4] sm:$0x1] %vm836_vm15, %v857_v28  ;;  %671 = vrot.lane.b32.xlu1 %v1438_v13, %s1157_s8 }
0x11da   :  { %862 = vst.msk [vmem:[#allocation4 + $0xc] sm:$0x1] %vm836_vm15, %v859_v9 }
0x123a   :  { %v813_v23 = vpop.permute.xlu1 %812 }
0x123b   :  { %v815_v25 = vmul.f32 %v813_v23, %v810_v29 }
0x123d   :  { %v817_v26 = vadd.f32 %v816_v30, %v815_v25 }
0x123f   :  { %v826_v20 = vsel %vm818_vm0, %v817_v26, %v1447_v46  ;;  %v819_v31 = vsel %vm818_vm0, %v817_v26, 0.0 }
0x1240   :  { %828 = vrot.lane.b32.xlu1 %v826_v20, %s1157_s8  ;;  %821 = vrot.lane.b32.xlu0 %v819_v31, %s1157_s8 }
0x1242   :  { %v447_v33 = vpop.permute.xlu1 %446 }
0x1243   :  { %450 = vst.msk [vmem:[#allocation3 + $0x4] sm:$0x3] %vm299_vm14, %v447_v33 }
0x124a   :  { %v845_v13 = vld [vmem:[#allocation3 + $0x4] sm:$0x3]  ;;  %v672_v34 = vpop.permute.xlu1 %671 }
0x124b   :  { %v847_v35 = vrot.slane %v845_v13, 1  ;;  %849 = vst.msk [vmem:[#allocation4 + $0x2] sm:$0x1] %vm836_vm15, %v845_v13 }
0x124c   :  { %675 = vst.msk [vmem:[#allocation3 + $0xa] sm:$0x3] %vm299_vm14, %v672_v34 }
0x124d   :  { %850 = vst.msk [vmem:[#allocation4 + $0xa] sm:$0x1] %vm836_vm15, %v847_v35 }
0x1253   :  { %v863_v8 = vld [vmem:[#allocation3 + $0xa] sm:$0x3] }
0x1254   :  { %v865_v36 = vrot.slane %v863_v8, 1  ;;  %867 = vst.msk [vmem:[#allocation4 + $0x5] sm:$0x1] %vm836_vm15, %v863_v8 }
0x1256   :  { %868 = vst.msk [vmem:[#allocation4 + $0xd] sm:$0x1] %vm836_vm15, %v865_v36 }
0x12b2   :  { %v829_v37 = vpop.permute.xlu1 %828  ;;  %v822_v39 = vpop.permute.xlu0 %821 }
0x12b3   :  { %831 = vst.msk [vmem:[#allocation11] sm:$0x3] %vm299_vm14, %v829_v37 }
0x12b4   :  { %825 = vst.msk [vmem:[#allocation3 + $0xe] sm:$0x3] %vm299_vm14, %v822_v39 }
0x12bb   :  { %v875_v41 = vld [vmem:[#allocation3 + $0xe] sm:$0x3] }
0x12bc   :  { %v877_v42 = vrot.slane %v875_v41, 1  ;;  %879 = vst.msk [vmem:[#allocation4 + $0x7] sm:$0x1] %vm836_vm15, %v875_v41 }
0x12be   :  { %880 = vst.msk [vmem:[#allocation4 + $0xf] sm:$0x1] %vm836_vm15, %v877_v42 }
0x12bf   :  { %1149 = dma.done.wait [#allocation6], 512 }
0x12c0   :  { %1150 = vsyncadd [#allocation6], 4294966784  ;;  %912 = vmatpush.msrb.mxu0 %v1249_v3  ;;  %v1078_v45 = vld [vmem:[%s1530_s10] ss:$0 sm:$0xff]  ;;  %vm923_vm3 = vcmask 130048   ;;  %s1159_s10 = smov [#allocation11]  }
0x12c1   :  { %s970_s22 = sshll.u32 %s1159_s10, 4  ;;  %s972_s25 = sshll.u32 %s1532_s12, 4  ;;  %s971_s22 = int_to_ptr.vmem [resolvable:$true] %s970_s22  ;;  %s973_s25 = int_to_ptr.hbm [resolvable:$true] %s972_s25 }
0x12c2   :  { %913 = vmatpush.msrb.mxu0 %v1244_v2  ;;  %975 = dma.vmem_to_hbm [thread:$0]  %s971_s22, 32, %s973_s25, [#allocation12]  }
0x12c3   :  { %v884_v43 = vld [vmem:[#allocation4] sm:$0xff]  ;;  %s1160_s26 = smov [#allocation9]   ;;  %s958_s12 = sshll.u32 %s1531_s11, 4  ;;  %s959_s12 = int_to_ptr.hbm [resolvable:$true] %s958_s12 }
0x12c4   :  { %914 = vmatpush.msrb.mxu0 %v1239_v1  ;;  %s956_s27 = sshll.u32 %s1160_s26, 4  ;;  %s1161_s7 = smov 128   ;;  %s957_s27 = int_to_ptr.vmem [resolvable:$true] %s956_s27 }
0x12c5   :  { %v885_v44 = vld [vmem:[#allocation4 + $0x8] sm:$0xff]  ;;  %s1162_s29 = smov 8  }
0x12c6   :  { %915 = vmatpush.msrb.mxu0 %v1234_v0 }
0x12c7   :  { %1016 = vmatmul.msk.f32.vlgmr.msrb.gmra.mxu0 %vm176_vm1, %v884_v43 }
0x12cf   :  { %1017 = vmatmul.msk.f32.gmra.mxu0 %vm176_vm1, %v885_v44 }
0x1344   :  { %v917_v46 = vpop.f32.mrf.mxu0 }
0x1345   :  { %v918_v48 = vadd.f32 %v1078_v45, %v917_v46 }
0x1347   :  { %v924_v3 = vsel %vm923_vm3, %v918_v48, -inf }
0x1348   :  { %925 = vmax.xlane.f32.xlu0 %v924_v3 }
0x134c   :  { %v920_v2 = vpop.f32.mrf.mxu0 }
0x134d   :  { %v921_v1 = vadd.f32 %v1078_v45, %v920_v2 }
0x134f   :  { %v927_v0 = vsel %vm923_vm3, %v921_v1, -inf }
0x1350   :  { %928 = vmax.xlane.f32.xlu0 %v927_v0 }
0x13bb   :  { %v926_v49 = vpop.xlane.xlu0 %925 }
0x13bc   :  { %v930_v50 = vsub.f32 %v918_v48, %v926_v49 }
0x13be   :  { %v932_v51 = vmul.f32 1.442695, %v930_v50 }
0x13c0   :  { %1079 = vpow2.f32 %v932_v51 }
0x13c3   :  { %v929_v52 = vpop.xlane.xlu0 %928 }
0x13c4   :  { %v931_v53 = vsub.f32 %v921_v1, %v929_v52 }
0x13c6   :  { %v1080_v54 = vpop.eup %1079  ;;  %v934_v55 = vmul.f32 1.442695, %v931_v53 }
0x13c7   :  { %v936_v56 = vsel %vm923_vm3, %v1080_v54, 0.0 }
0x13c8   :  { %1081 = vpow2.f32 %v934_v55  ;;  %937 = vadd.xlane.f32.xlu1 %v936_v56 }
0x13ce   :  { %v1082_v57 = vpop.eup %1081 }
0x13cf   :  { %v939_v58 = vsel %vm923_vm3, %v1082_v57, 0.0 }
0x13d0   :  { %940 = vadd.xlane.f32.xlu1 %v939_v58 }
0x143b   :  { %v938_v38 = vpop.xlane.xlu1 %937 }
0x143c   :  { %1083 = vlog2.f32 %v938_v38 }
0x1442   :  { %v1084_v59 = vpop.eup %1083 }
0x1443   :  { %v943_v60 = vmul.f32 0.6931472, %v1084_v59  ;;  %v941_v62 = vpop.xlane.xlu1 %940 }
0x1444   :  { %1085 = vlog2.f32 %v941_v62 }
0x1445   :  { %v946_v16 = vadd.f32 %v943_v60, %v926_v49 }
0x1447   :  { %v948_v61 = vsub.f32 %v918_v48, %v946_v16 }
0x1449   :  { %950 = vst.msk [vmem:[#allocation9] sm:$0xff] %vm923_vm3, %v948_v61 }
0x144a   :  { %v1086_v63 = vpop.eup %1085 }
0x144b   :  { %v945_v4 = vmul.f32 0.6931472, %v1086_v63 }
0x144d   :  { %v947_v5 = vadd.f32 %v945_v4, %v929_v52 }
0x144f   :  { %v949_v6 = vsub.f32 %v921_v1, %v947_v5 }
0x1451   :  { %951 = vst.msk [vmem:[#allocation9 + $0x8] sm:$0xff] %vm923_vm3, %v949_v6 }
0x1452   :  { %964 = dma.vmem_to_hbm [thread:$0]  %s957_s27, 256, %s959_s12, [#allocation10], %s1161_s7, %s1161_s7, %s1162_s29  }
0x1453   :  { %1151 = dma.done.wait [#allocation10], 256  }
0x1454   :  { %1152 = vsyncadd [#allocation10], 4294967040 }
0x1455   :  { %1153 = dma.done.wait [#allocation12], 32  }
0x1456   :  { %1154 = vsyncadd [#allocation12], 4294967264 }
0x1457   :  { %984 = vsyncpa [#allocation10], 1 }
0x1458   :  { %985 = vsyncpa [#allocation12], 1 }
0x1459   :  { %986 = vsyncmov [#allocation6] }
0x145c   :  { %s987_s0 = vpop.sfrf %986 }
0x145d   :  { %p1018_p0 = scmp.ne.s32.totalorder %s987_s0, 0 }
0x145f   :  { %991 = shalt.err (%p1018_p0)  }

</bundles_post_ra>
